<compile_context>
chip_gen: v7x
topology: tpu7x:2x2x1
jax: 0.10.0
libtpu: 0.0.40
codegen_flags: <defaults>
</compile_context>

<pallas_src>
import functools

import jax
import jax.numpy as jnp
from jax.experimental import pallas as pl
from jax.experimental.pallas import tpu as pltpu


def _ginnet_kernel(num_layers, tile_n, a_resident,
                   x_ref, a_ref,
                   nl_w1, nl_b1, nl_w2, nl_b2,
                   w1_ref, b1_ref, w2_ref, b2_ref,
                   l1_w, l1_b, l2_w, l2_b,
                   out_ref,
                   h_buf0, h_buf1):
    f32 = jnp.float32
    bf16 = jnp.bfloat16

    s = pl.program_id(0)                       # stage: 0=node_lin, 1..L=GIN, L+1=head
    r = pl.program_id(1)                       # node-row tile
    row0 = pl.multiple_of(r * tile_n, tile_n)
    rows = pl.ds(row0, tile_n)

    # ---- stage 0: node_lin = Linear -> ReLU -> Linear, into h_buf0 ----------
    @pl.when(s == 0)
    def _node_lin():
        x = x_ref[...]                                           # already bf16
        t = jnp.dot(x, nl_w1[...], preferred_element_type=f32) + nl_b1[...]
        t = jnp.maximum(t, 0.0)
        t = jnp.dot(t.astype(bf16), nl_w2[...], preferred_element_type=f32) + nl_b2[...]
        h_buf0[rows, :] = t.astype(bf16)

    # ---- stages 1..L: GIN conv (A' already contains (1+eps)*I) + ReLU -------
    def _gin_layer(h_src, h_dst):
        a_tile = a_ref[rows, :] if a_resident else a_ref[...]    # bf16
        agg = jnp.dot(a_tile, h_src[...], preferred_element_type=f32)
        t = jnp.dot(agg.astype(bf16), w1_ref[0], preferred_element_type=f32) + b1_ref[0]
        t = jnp.maximum(t, 0.0)
        t = jnp.dot(t.astype(bf16), w2_ref[0], preferred_element_type=f32) + b2_ref[0]
        h_dst[rows, :] = jnp.maximum(t, 0.0).astype(bf16)        # x = x.relu()

    is_gin = jnp.logical_and(s >= 1, s <= num_layers)
    layer_parity = jnp.mod(s - 1, 2)

    @pl.when(jnp.logical_and(is_gin, layer_parity == 0))
    def _():
        _gin_layer(h_buf0, h_buf1)

    @pl.when(jnp.logical_and(is_gin, layer_parity == 1))
    def _():
        _gin_layer(h_buf1, h_buf0)

    # ---- stage L+1: head lin1 -> ReLU -> lin2 --------------------------------
    h_final = (h_buf0, h_buf1)[num_layers % 2]

    @pl.when(s == num_layers + 1)
    def _head():
        h = h_final[rows, :]                                     # bf16
        t = jnp.dot(h, l1_w[...], preferred_element_type=f32) + l1_b[...]
        t = jnp.maximum(t, 0.0)
        out_ref[...] = jnp.dot(t.astype(bf16), l2_w[...],
                               preferred_element_type=f32) + l2_b[...]


def _round_up(v, m):
    return (v + m - 1) // m * m


def _pad2d(a, rows, cols):
    out = jnp.zeros((rows, cols), a.dtype)
    return out.at[:a.shape[0], :a.shape[1]].set(a)


def _pad_stack(a, rows, cols):
    out = jnp.zeros((a.shape[0], rows, cols), a.dtype)
    return out.at[:, :a.shape[1], :a.shape[2]].set(a)


def ginnet_forward(x, pos, edge_index, batch, params, *, eps=0.0, num_layers=3,
                   tile_n=256):
    # pos / batch accepted for API parity with the torch module; forward() never
    # uses them (readout is not applied in forward()).
    del pos, batch
    n, c_in = x.shape
    hidden = params['nl_w1'].shape[1]
    h2 = params['l1_w'].shape[1]
    c_out = params['l2_w'].shape[1]

    # lane-pad every channel dim to a multiple of 128 (zero padding is exact)
    c_in_p = _round_up(c_in, 128)
    h_p = _round_up(hidden, 128)
    h2_p = _round_up(h2, 128)
    out_p = _round_up(c_out, 128)

    # 128-aligned node padding; tile_n is a power-of-two multiple of 128 so the
    # A' tiles / h rows stay (8,128)-dense and the VMEM-fit shrink loop below
    # keeps divisibility.
    n_pad = _round_up(n, 128)
    tile_n = max(128, min(int(tile_n), n_pad))
    t = 128
    while t * 2 <= tile_n:
        t *= 2
    tile_n = t
    n_pad = _round_up(n_pad, tile_n)

    # ---- generation-aware VMEM budget (v7x 64 MiB vs v5e/v6e 128 MiB) -------
    try:
        info = pltpu.get_tpu_info()
        phys_vmem = int(getattr(info, 'vmem_capacity_bytes', 64 << 20))
    except Exception:  # pragma: no cover - interpret/unknown backends
        phys_vmem = 64 << 20
    vmem_cap = int(phys_vmem * 0.8)          # headroom for compiler scratch/sems

    def _budget(tile, resident):
        weight_blocks = 2 * (                                  # double-buffered
            c_in_p * h_p * 2 + h_p * 4 +                       # nl_w1 / nl_b1
            h_p * h_p * 2 + h_p * 4 +                          # nl_w2 / nl_b2
            2 * (h_p * h_p * 2 + h_p * 4) +                    # one layer's MLP
            h_p * h2_p * 2 + h2_p * 4 +                        # l1
            h2_p * out_p * 2 + out_p * 4)                      # l2
        scratch = 2 * n_pad * h_p * 2                          # bf16 h ping-pong
        x_b = 2 * tile * c_in_p * 2
        out_b = 2 * tile * out_p * 4
        a_b = 2 * (n_pad * n_pad * 2 if resident else tile * n_pad * 2)
        return weight_blocks + scratch + x_b + out_b + a_b

    a_resident = _budget(tile_n, True) <= vmem_cap
    if not a_resident:
        # shrink streamed A' row tiles until the working set fits the budget
        while tile_n > 128 and _budget(tile_n, False) > vmem_cap:
            tile_n //= 2
        n_pad = _round_up(n_pad, tile_n)

    num_tiles = n_pad // tile_n
    need = _budget(tile_n, a_resident) + (4 << 20)
    vmem_limit = int(min(max(need, 32 << 20), max(vmem_cap, 32 << 20)))

    # A' = A + (1+eps) I, dense, bf16.  NOTE: bf16 rounds edge multiplicities
    # above 256 and large eps values (exact for small counts / eps=0).
    # TODO(synk): scalar-prefetched block-sparse A' for large sparse graphs.
    src, dst = edge_index[0], edge_index[1]
    adj = jnp.zeros((n_pad, n_pad), jnp.float32).at[dst, src].add(1.0)
    adj = adj.at[jnp.arange(n), jnp.arange(n)].add(1.0 + float(eps))
    adj = adj.astype(jnp.bfloat16)

    # x shipped bf16: it is only ever an MXU operand.
    x_p = _pad2d(x, n_pad, c_in_p).astype(jnp.bfloat16)

    bf16, f32 = jnp.bfloat16, jnp.float32
    wargs = (
        _pad2d(params['nl_w1'], c_in_p, h_p).astype(bf16),
        _pad2d(params['nl_b1'], 1, h_p).astype(f32),
        _pad2d(params['nl_w2'], h_p, h_p).astype(bf16),
        _pad2d(params['nl_b2'], 1, h_p).astype(f32),
        _pad_stack(params['mlp_w1'], h_p, h_p).astype(bf16),
        _pad_stack(params['mlp_b1'], 1, h_p).astype(f32),
        _pad_stack(params['mlp_w2'], h_p, h_p).astype(bf16),
        _pad_stack(params['mlp_b2'], 1, h_p).astype(f32),
        _pad2d(params['l1_w'], h_p, h2_p).astype(bf16),
        _pad2d(params['l1_b'], 1, h2_p).astype(f32),
        _pad2d(params['l2_w'], h2_p, out_p).astype(bf16),
        _pad2d(params['l2_b'], 1, out_p).astype(f32),
    )

    last_tile = num_tiles - 1

    # x is consumed only at stage 0: freeze afterwards on the last-used block so
    # no redundant DMA is issued for later stages.
    def x_map(s, r):
        return (jnp.where(s == 0, r, last_tile), 0)

    # A' is consumed only at GIN stages; freeze on block 0 before (it is the
    # next-needed block) and on the last-used block at the head stage.
    def a_map(s, r):
        blk = jnp.where(s == 0, 0,
                        jnp.where(s <= num_layers, r, last_tile))
        return (blk, 0)

    def a_map_resident(s, r):
        return (0, 0)

    # out is produced only at the head stage: freeze on block 0 before, so no
    # stale HBM writebacks happen during node_lin / GIN stages.
    def out_map(s, r):
        return (jnp.where(s == num_layers + 1, r, 0), 0)

    def resident2(s, r):
        return (0, 0)

    def per_layer3(s, r):
        # stage s -> GIN layer s-1, clamped so stage 0 / head keep a valid slab
        layer = jnp.maximum(jnp.minimum(s - 1, num_layers - 1), 0)
        return (layer, 0, 0)

    if a_resident:
        a_spec = pl.BlockSpec((n_pad, n_pad), a_map_resident)
    else:
        a_spec = pl.BlockSpec((tile_n, n_pad), a_map)

    in_specs = [
        pl.BlockSpec((tile_n, c_in_p), x_map),        # x row tile (stage 0 only)
        a_spec,                                       # A' (resident or streamed)
        pl.BlockSpec((c_in_p, h_p), resident2),       # nl_w1
        pl.BlockSpec((1, h_p), resident2),            # nl_b1
        pl.BlockSpec((h_p, h_p), resident2),          # nl_w2
        pl.BlockSpec((1, h_p), resident2),            # nl_b2
        pl.BlockSpec((1, h_p, h_p), per_layer3),      # mlp_w1[layer]
        pl.BlockSpec((1, 1, h_p), per_layer3),        # mlp_b1[layer]
        pl.BlockSpec((1, h_p, h_p), per_layer3),      # mlp_w2[layer]
        pl.BlockSpec((1, 1, h_p), per_layer3),        # mlp_b2[layer]
        pl.BlockSpec((h_p, h2_p), resident2),         # l1_w
        pl.BlockSpec((1, h2_p), resident2),           # l1_b
        pl.BlockSpec((h2_p, out_p), resident2),       # l2_w
        pl.BlockSpec((1, out_p), resident2),          # l2_b
    ]
    out_spec = pl.BlockSpec((tile_n, out_p), out_map)

    kernel = functools.partial(_ginnet_kernel, num_layers, tile_n, a_resident)
    out_padded = pl.pallas_call(
        kernel,
        grid=(num_layers + 2, num_tiles),
        in_specs=in_specs,
        out_specs=out_spec,
        out_shape=jax.ShapeDtypeStruct((n_pad, out_p), jnp.float32),
        scratch_shapes=[pltpu.VMEM((n_pad, h_p), jnp.bfloat16),
                        pltpu.VMEM((n_pad, h_p), jnp.bfloat16)],
        compiler_params=pltpu.CompilerParams(
            # Stage axis is a serial dependency chain; the row axis shares the
            # h ping-pong scratch across tiles, so both stay "arbitrary".
            dimension_semantics=("arbitrary", "arbitrary"),
            vmem_limit_bytes=vmem_limit),
    )(x_p, adj, *wargs)

    return out_padded[:n, :c_out]


def _xavier(key, shape):
    fan_in, fan_out = shape[-2], shape[-1]
    bound = (6.0 / (fan_in + fan_out)) ** 0.5
    return jax.random.uniform(key, shape, jnp.float32, -bound, bound)


def init_params(key, c_in, hidden, c_out, num_layers=3):
    ks = jax.random.split(key, 8)
    h2 = hidden // 2
    return {
        # weights stored (in, out); torch Linear is x @ W.T
        'nl_w1': _xavier(ks[0], (c_in, hidden)),
        'nl_b1': jnp.zeros((1, hidden), jnp.float32),
        'nl_w2': _xavier(ks[1], (hidden, hidden)),
        'nl_b2': jnp.zeros((1, hidden), jnp.float32),
        'mlp_w1': _xavier(ks[2], (num_layers, hidden, hidden)),
        'mlp_b1': jnp.zeros((num_layers, 1, hidden), jnp.float32),
        'mlp_w2': _xavier(ks[3], (num_layers, hidden, hidden)),
        'mlp_b2': jnp.zeros((num_layers, 1, hidden), jnp.float32),
        'l1_w': _xavier(ks[4], (hidden, hidden // 2)),
        'l1_b': jnp.zeros((1, h2), jnp.float32),
        'l2_w': _xavier(ks[5], (h2, c_out)),
        'l2_b': jnp.zeros((1, c_out), jnp.float32),
    }


def reference_forward(x, edge_index, params, *, eps=0.0, num_layers=3):
    # Pure-JAX reference using the same bf16-operand / f32-accumulation recipe
    # as the kernel so the comparison is apples-to-apples.
    bf16, f32 = jnp.bfloat16, jnp.float32

    def mm(a, w):
        return jnp.dot(a.astype(bf16), w.astype(bf16), preferred_element_type=f32)

    src, dst = edge_index[0], edge_index[1]
    h = jnp.maximum(mm(x, params['nl_w1']) + params['nl_b1'], 0.0)
    h = mm(h, params['nl_w2']) + params['nl_b2']
    for i in range(num_layers):
        hb = h.astype(bf16).astype(f32)
        agg = jnp.zeros_like(h).at[dst].add(hb[src])      # 'add' aggregation
        msg = agg + (1.0 + eps) * hb
        t = jnp.maximum(mm(msg, params['mlp_w1'][i]) + params['mlp_b1'][i], 0.0)
        t = mm(t, params['mlp_w2'][i]) + params['mlp_b2'][i]
        h = jnp.maximum(t, 0.0)
    y = jnp.maximum(mm(h, params['l1_w']) + params['l1_b'], 0.0)
    return mm(y, params['l2_w']) + params['l2_b']


if __name__ == "__main__":
    key = jax.random.PRNGKey(0)
    k_x, k_e, k_p, k_pos = jax.random.split(key, 4)

    N, C_IN, HIDDEN, C_OUT, E, LAYERS = 64, 8, 32, 4, 128, 3

    x = jax.random.normal(k_x, (N, C_IN), jnp.float32)
    pos = jax.random.normal(k_pos, (N, 3), jnp.float32)        # unused by forward
    edge_index = jax.random.randint(k_e, (2, E), 0, N, jnp.int32)
    batch = jnp.zeros((N,), jnp.int32)                         # unused by forward

    params = init_params(k_p, C_IN, HIDDEN, C_OUT, num_layers=LAYERS)

    out = ginnet_forward(x, pos, edge_index, batch, params,
                         eps=0.0, num_layers=LAYERS)
    out = jax.block_until_ready(out)

    ref = reference_forward(x, edge_index, params, eps=0.0, num_layers=LAYERS)
    assert out.shape == (N, C_OUT)
    # bf16 matmul operands (f32 accumulation) on both sides; tolerance covers
    # accumulation-order / rounding-boundary differences only.
    assert jnp.allclose(out, ref, atol=3e-2, rtol=3e-2), "mismatch vs reference"

    print("KERNEL_OK")
</pallas_src>

<mosaic_0001>
module attributes {stable_mosaic.version = 11 : i64} {
  func.func @_ginnet_kernel(%arg0: i32, %arg1: i32, %arg2: memref<128x128xbf16, #tpu.memory_space<vmem>>, %arg3: memref<128x128xbf16, #tpu.memory_space<vmem>>, %arg4: memref<128x128xbf16, #tpu.memory_space<vmem>>, %arg5: memref<1x128xf32, #tpu.memory_space<vmem>>, %arg6: memref<128x128xbf16, #tpu.memory_space<vmem>>, %arg7: memref<1x128xf32, #tpu.memory_space<vmem>>, %arg8: memref<1x128x128xbf16, #tpu.memory_space<vmem>>, %arg9: memref<1x1x128xf32, #tpu.memory_space<vmem>>, %arg10: memref<1x128x128xbf16, #tpu.memory_space<vmem>>, %arg11: memref<1x1x128xf32, #tpu.memory_space<vmem>>, %arg12: memref<128x128xbf16, #tpu.memory_space<vmem>>, %arg13: memref<1x128xf32, #tpu.memory_space<vmem>>, %arg14: memref<128x128xbf16, #tpu.memory_space<vmem>>, %arg15: memref<1x128xf32, #tpu.memory_space<vmem>>, %arg16: memref<128x128xf32, #tpu.memory_space<vmem>>, %arg17: memref<128x128xbf16, #tpu.memory_space<vmem>>, %arg18: memref<128x128xbf16, #tpu.memory_space<vmem>>) attributes {dimension_semantics = [#tpu.dimension_semantics<arbitrary>, #tpu.dimension_semantics<arbitrary>], iteration_bounds = array<i64: 5, 1>, scalar_prefetch = 0 : i64, scratch_operands = 2 : i64, tpu.core_type = #tpu.core_type<tc>, window_params = [{transform_indices = @transform_0, window_bounds = array<i64: 128, 128>}, {pipeline_mode = #tpu.pipeline_mode<synchronous>, transform_indices = @transform_1, window_bounds = array<i64: 128, 128>}, {pipeline_mode = #tpu.pipeline_mode<synchronous>, transform_indices = @transform_2, window_bounds = array<i64: 128, 128>}, {pipeline_mode = #tpu.pipeline_mode<synchronous>, transform_indices = @transform_3, window_bounds = array<i64: 1, 128>}, {pipeline_mode = #tpu.pipeline_mode<synchronous>, transform_indices = @transform_4, window_bounds = array<i64: 128, 128>}, {pipeline_mode = #tpu.pipeline_mode<synchronous>, transform_indices = @transform_5, window_bounds = array<i64: 1, 128>}, {transform_indices = @transform_6, window_bounds = array<i64: 1, 128, 128>}, {transform_indices = @transform_7, window_bounds = array<i64: 1, 1, 128>}, {transform_indices = @transform_8, window_bounds = array<i64: 1, 128, 128>}, {transform_indices = @transform_9, window_bounds = array<i64: 1, 1, 128>}, {pipeline_mode = #tpu.pipeline_mode<synchronous>, transform_indices = @transform_10, window_bounds = array<i64: 128, 128>}, {pipeline_mode = #tpu.pipeline_mode<synchronous>, transform_indices = @transform_11, window_bounds = array<i64: 1, 128>}, {pipeline_mode = #tpu.pipeline_mode<synchronous>, transform_indices = @transform_12, window_bounds = array<i64: 128, 128>}, {pipeline_mode = #tpu.pipeline_mode<synchronous>, transform_indices = @transform_13, window_bounds = array<i64: 1, 128>}, {transform_indices = @transform_14, window_bounds = array<i64: 128, 128>}]} {
    %c128_i32 = arith.constant 128 : i32
    %0 = arith.muli %arg1, %c128_i32 : i32
    %1 = tpu.assume_multiple %0, 128 : i32
    %c0_i32 = arith.constant 0 : i32
    %2 = arith.cmpi eq, %arg0, %c0_i32 : i32
    %3 = arith.extui %2 : i1 to i32
    %c0_i32_0 = arith.constant 0 : i32
    %4 = arith.cmpi ne, %3, %c0_i32_0 : i32
    scf.if %4 {
      %c0 = arith.constant 0 : index
      %c0_12 = arith.constant 0 : index
      %30 = vector.load %arg2[%c0, %c0_12] : memref<128x128xbf16, #tpu.memory_space<vmem>>, vector<128x128xbf16>
      %c0_13 = arith.constant 0 : index
      %c0_14 = arith.constant 0 : index
      %31 = vector.load %arg4[%c0_13, %c0_14] : memref<128x128xbf16, #tpu.memory_space<vmem>>, vector<128x128xbf16>
      %cst = arith.constant dense<0.000000e+00> : vector<128x128xf32>
      %32 = tpu.matmul %30, %31, %cst {dimension_numbers = #tpu.dot_dimension_numbers<[1], [0], [0], [1], [0, 0, 1, 1], [], []>} : vector<128x128xbf16>, vector<128x128xbf16>, vector<128x128xf32> -> vector<128x128xf32>
      %c0_15 = arith.constant 0 : index
      %c0_16 = arith.constant 0 : index
      %33 = vector.load %arg5[%c0_15, %c0_16] : memref<1x128xf32, #tpu.memory_space<vmem>>, vector<1x128xf32>
      %34 = vector.broadcast %33 : vector<1x128xf32> to vector<128x128xf32>
      %35 = arith.addf %32, %34 : vector<128x128xf32>
      %cst_17 = arith.constant 0.000000e+00 : f32
      %36 = vector.broadcast %cst_17 : f32 to vector<128x128xf32>
      %37 = arith.maximumf %35, %36 : vector<128x128xf32>
      %38 = arith.truncf %37 : vector<128x128xf32> to vector<128x128xbf16>
      %c0_18 = arith.constant 0 : index
      %c0_19 = arith.constant 0 : index
      %39 = vector.load %arg6[%c0_18, %c0_19] : memref<128x128xbf16, #tpu.memory_space<vmem>>, vector<128x128xbf16>
      %cst_20 = arith.constant dense<0.000000e+00> : vector<128x128xf32>
      %40 = tpu.matmul %38, %39, %cst_20 {dimension_numbers = #tpu.dot_dimension_numbers<[1], [0], [0], [1], [0, 0, 1, 1], [], []>} : vector<128x128xbf16>, vector<128x128xbf16>, vector<128x128xf32> -> vector<128x128xf32>
      %c0_21 = arith.constant 0 : index
      %c0_22 = arith.constant 0 : index
      %41 = vector.load %arg7[%c0_21, %c0_22] : memref<1x128xf32, #tpu.memory_space<vmem>>, vector<1x128xf32>
      %42 = vector.broadcast %41 : vector<1x128xf32> to vector<128x128xf32>
      %43 = arith.addf %40, %42 : vector<128x128xf32>
      %44 = arith.truncf %43 : vector<128x128xf32> to vector<128x128xbf16>
      %45 = arith.index_cast %1 : i32 to index
      %c0_23 = arith.constant 0 : index
      %46 = vector.load %arg17[%45, %c0_23] : memref<128x128xbf16, #tpu.memory_space<vmem>>, vector<128x128xbf16>
      tpu.vector_store %arg17[%45, %c0_23], %44 {strides = array<i32>} : memref<128x128xbf16, #tpu.memory_space<vmem>>, vector<128x128xbf16>,
    } else {
    }
    %c1_i32 = arith.constant 1 : i32
    %5 = arith.cmpi sge, %arg0, %c1_i32 : i32
    %c3_i32 = arith.constant 3 : i32
    %6 = arith.cmpi sle, %arg0, %c3_i32 : i32
    %7 = arith.andi %5, %6 : i1
    %c1_i32_1 = arith.constant 1 : i32
    %8 = arith.subi %arg0, %c1_i32_1 : i32
    %c2_i32 = arith.constant 2 : i32
    %c0_i32_2 = arith.constant 0 : i32
    %9 = arith.cmpi eq, %c2_i32, %c0_i32_2 : i32
    %c1_i32_3 = arith.constant 1 : i32
    %10 = arith.select %9, %c1_i32_3, %c2_i32 : i32
    %11 = arith.remsi %8, %10 : i32
    %c0_i32_4 = arith.constant 0 : i32
    %12 = arith.cmpi ne, %11, %c0_i32_4 : i32
    %c0_i32_5 = arith.constant 0 : i32
    %13 = arith.cmpi slt, %11, %c0_i32_5 : i32
    %c0_i32_6 = arith.constant 0 : i32
    %14 = arith.cmpi slt, %10, %c0_i32_6 : i32
    %15 = arith.xori %13, %14 : i1
    %16 = arith.andi %15, %12 : i1
    %17 = arith.addi %11, %10 : i32
    %18 = arith.select %16, %17, %11 : i32
    %c0_i32_7 = arith.constant 0 : i32
    %19 = arith.cmpi eq, %18, %c0_i32_7 : i32
    %20 = arith.andi %7, %19 : i1
    %21 = arith.extui %20 : i1 to i32
    %c0_i32_8 = arith.constant 0 : i32
    %22 = arith.cmpi ne, %21, %c0_i32_8 : i32
    scf.if %22 {
      %30 = arith.index_cast %1 : i32 to index
      %c0 = arith.constant 0 : index
      %31 = vector.load %arg3[%30, %c0] : memref<128x128xbf16, #tpu.memory_space<vmem>>, vector<128x128xbf16>
      %c0_12 = arith.constant 0 : index
      %c0_13 = arith.constant 0 : index
      %32 = vector.load %arg17[%c0_12, %c0_13] : memref<128x128xbf16, #tpu.memory_space<vmem>>, vector<128x128xbf16>
      %cst = arith.constant dense<0.000000e+00> : vector<128x128xf32>
      %33 = tpu.matmul %31, %32, %cst {dimension_numbers = #tpu.dot_dimension_numbers<[1], [0], [0], [1], [0, 0, 1, 1], [], []>} : vector<128x128xbf16>, vector<128x128xbf16>, vector<128x128xf32> -> vector<128x128xf32>
      %34 = arith.truncf %33 : vector<128x128xf32> to vector<128x128xbf16>
      %c0_14 = arith.constant 0 : index
      %c0_15 = arith.constant 0 : index
      %c0_16 = arith.constant 0 : index
      %35 = vector.load %arg8[%c0_14, %c0_15, %c0_16] : memref<1x128x128xbf16, #tpu.memory_space<vmem>>, vector<1x128x128xbf16>
      %36 = vector.shape_cast %35 : vector<1x128x128xbf16> to vector<128x128xbf16>
      %cst_17 = arith.constant dense<0.000000e+00> : vector<128x128xf32>
      %37 = tpu.matmul %34, %36, %cst_17 {dimension_numbers = #tpu.dot_dimension_numbers<[1], [0], [0], [1], [0, 0, 1, 1], [], []>} : vector<128x128xbf16>, vector<128x128xbf16>, vector<128x128xf32> -> vector<128x128xf32>
      %c0_18 = arith.constant 0 : index
      %c0_19 = arith.constant 0 : index
      %c0_20 = arith.constant 0 : index
      %38 = vector.load %arg9[%c0_18, %c0_19, %c0_20] : memref<1x1x128xf32, #tpu.memory_space<vmem>>, vector<1x1x128xf32>
      %39 = vector.shape_cast %38 : vector<1x1x128xf32> to vector<1x128xf32>
      %40 = vector.broadcast %39 : vector<1x128xf32> to vector<128x128xf32>
      %41 = arith.addf %37, %40 : vector<128x128xf32>
      %cst_21 = arith.constant 0.000000e+00 : f32
      %42 = vector.broadcast %cst_21 : f32 to vector<128x128xf32>
      %43 = arith.maximumf %41, %42 : vector<128x128xf32>
      %44 = arith.truncf %43 : vector<128x128xf32> to vector<128x128xbf16>
      %c0_22 = arith.constant 0 : index
      %c0_23 = arith.constant 0 : index
      %c0_24 = arith.constant 0 : index
      %45 = vector.load %arg10[%c0_22, %c0_23, %c0_24] : memref<1x128x128xbf16, #tpu.memory_space<vmem>>, vector<1x128x128xbf16>
      %46 = vector.shape_cast %45 : vector<1x128x128xbf16> to vector<128x128xbf16>
      %cst_25 = arith.constant dense<0.000000e+00> : vector<128x128xf32>
      %47 = tpu.matmul %44, %46, %cst_25 {dimension_numbers = #tpu.dot_dimension_numbers<[1], [0], [0], [1], [0, 0, 1, 1], [], []>} : vector<128x128xbf16>, vector<128x128xbf16>, vector<128x128xf32> -> vector<128x128xf32>
      %c0_26 = arith.constant 0 : index
      %c0_27 = arith.constant 0 : index
      %c0_28 = arith.constant 0 : index
      %48 = vector.load %arg11[%c0_26, %c0_27, %c0_28] : memref<1x1x128xf32, #tpu.memory_space<vmem>>, vector<1x1x128xf32>
      %49 = vector.shape_cast %48 : vector<1x1x128xf32> to vector<1x128xf32>
      %50 = vector.broadcast %49 : vector<1x128xf32> to vector<128x128xf32>
      %51 = arith.addf %47, %50 : vector<128x128xf32>
      %cst_29 = arith.constant 0.000000e+00 : f32
      %52 = vector.broadcast %cst_29 : f32 to vector<128x128xf32>
      %53 = arith.maximumf %51, %52 : vector<128x128xf32>
      %54 = arith.truncf %53 : vector<128x128xf32> to vector<128x128xbf16>
      %55 = arith.index_cast %1 : i32 to index
      %c0_30 = arith.constant 0 : index
      %56 = vector.load %arg18[%55, %c0_30] : memref<128x128xbf16, #tpu.memory_space<vmem>>, vector<128x128xbf16>
      tpu.vector_store %arg18[%55, %c0_30], %54 {strides = array<i32>} : memref<128x128xbf16, #tpu.memory_space<vmem>>, vector<128x128xbf16>,
    } else {
    }
    %c1_i32_9 = arith.constant 1 : i32
    %23 = arith.cmpi eq, %18, %c1_i32_9 : i32
    %24 = arith.andi %7, %23 : i1
    %25 = arith.extui %24 : i1 to i32
    %c0_i32_10 = arith.constant 0 : i32
    %26 = arith.cmpi ne, %25, %c0_i32_10 : i32
    scf.if %26 {
      %30 = arith.index_cast %1 : i32 to index
      %c0 = arith.constant 0 : index
      %31 = vector.load %arg3[%30, %c0] : memref<128x128xbf16, #tpu.memory_space<vmem>>, vector<128x128xbf16>
      %c0_12 = arith.constant 0 : index
      %c0_13 = arith.constant 0 : index
      %32 = vector.load %arg18[%c0_12, %c0_13] : memref<128x128xbf16, #tpu.memory_space<vmem>>, vector<128x128xbf16>
      %cst = arith.constant dense<0.000000e+00> : vector<128x128xf32>
      %33 = tpu.matmul %31, %32, %cst {dimension_numbers = #tpu.dot_dimension_numbers<[1], [0], [0], [1], [0, 0, 1, 1], [], []>} : vector<128x128xbf16>, vector<128x128xbf16>, vector<128x128xf32> -> vector<128x128xf32>
      %34 = arith.truncf %33 : vector<128x128xf32> to vector<128x128xbf16>
      %c0_14 = arith.constant 0 : index
      %c0_15 = arith.constant 0 : index
      %c0_16 = arith.constant 0 : index
      %35 = vector.load %arg8[%c0_14, %c0_15, %c0_16] : memref<1x128x128xbf16, #tpu.memory_space<vmem>>, vector<1x128x128xbf16>
      %36 = vector.shape_cast %35 : vector<1x128x128xbf16> to vector<128x128xbf16>
      %cst_17 = arith.constant dense<0.000000e+00> : vector<128x128xf32>
      %37 = tpu.matmul %34, %36, %cst_17 {dimension_numbers = #tpu.dot_dimension_numbers<[1], [0], [0], [1], [0, 0, 1, 1], [], []>} : vector<128x128xbf16>, vector<128x128xbf16>, vector<128x128xf32> -> vector<128x128xf32>
      %c0_18 = arith.constant 0 : index
      %c0_19 = arith.constant 0 : index
      %c0_20 = arith.constant 0 : index
      %38 = vector.load %arg9[%c0_18, %c0_19, %c0_20] : memref<1x1x128xf32, #tpu.memory_space<vmem>>, vector<1x1x128xf32>
      %39 = vector.shape_cast %38 : vector<1x1x128xf32> to vector<1x128xf32>
      %40 = vector.broadcast %39 : vector<1x128xf32> to vector<128x128xf32>
      %41 = arith.addf %37, %40 : vector<128x128xf32>
      %cst_21 = arith.constant 0.000000e+00 : f32
      %42 = vector.broadcast %cst_21 : f32 to vector<128x128xf32>
      %43 = arith.maximumf %41, %42 : vector<128x128xf32>
      %44 = arith.truncf %43 : vector<128x128xf32> to vector<128x128xbf16>
      %c0_22 = arith.constant 0 : index
      %c0_23 = arith.constant 0 : index
      %c0_24 = arith.constant 0 : index
      %45 = vector.load %arg10[%c0_22, %c0_23, %c0_24] : memref<1x128x128xbf16, #tpu.memory_space<vmem>>, vector<1x128x128xbf16>
      %46 = vector.shape_cast %45 : vector<1x128x128xbf16> to vector<128x128xbf16>
      %cst_25 = arith.constant dense<0.000000e+00> : vector<128x128xf32>
      %47 = tpu.matmul %44, %46, %cst_25 {dimension_numbers = #tpu.dot_dimension_numbers<[1], [0], [0], [1], [0, 0, 1, 1], [], []>} : vector<128x128xbf16>, vector<128x128xbf16>, vector<128x128xf32> -> vector<128x128xf32>
      %c0_26 = arith.constant 0 : index
      %c0_27 = arith.constant 0 : index
      %c0_28 = arith.constant 0 : index
      %48 = vector.load %arg11[%c0_26, %c0_27, %c0_28] : memref<1x1x128xf32, #tpu.memory_space<vmem>>, vector<1x1x128xf32>
      %49 = vector.shape_cast %48 : vector<1x1x128xf32> to vector<1x128xf32>
      %50 = vector.broadcast %49 : vector<1x128xf32> to vector<128x128xf32>
      %51 = arith.addf %47, %50 : vector<128x128xf32>
      %cst_29 = arith.constant 0.000000e+00 : f32
      %52 = vector.broadcast %cst_29 : f32 to vector<128x128xf32>
      %53 = arith.maximumf %51, %52 : vector<128x128xf32>
      %54 = arith.truncf %53 : vector<128x128xf32> to vector<128x128xbf16>
      %55 = arith.index_cast %1 : i32 to index
      %c0_30 = arith.constant 0 : index
      %56 = vector.load %arg17[%55, %c0_30] : memref<128x128xbf16, #tpu.memory_space<vmem>>, vector<128x128xbf16>
      tpu.vector_store %arg17[%55, %c0_30], %54 {strides = array<i32>} : memref<128x128xbf16, #tpu.memory_space<vmem>>, vector<128x128xbf16>,
    } else {
    }
    %c4_i32 = arith.constant 4 : i32
    %27 = arith.cmpi eq, %arg0, %c4_i32 : i32
    %28 = arith.extui %27 : i1 to i32
    %c0_i32_11 = arith.constant 0 : i32
    %29 = arith.cmpi ne, %28, %c0_i32_11 : i32
    scf.if %29 {
      %30 = arith.index_cast %1 : i32 to index
      %c0 = arith.constant 0 : index
      %31 = vector.load %arg18[%30, %c0] : memref<128x128xbf16, #tpu.memory_space<vmem>>, vector<128x128xbf16>
      %c0_12 = arith.constant 0 : index
      %c0_13 = arith.constant 0 : index
      %32 = vector.load %arg12[%c0_12, %c0_13] : memref<128x128xbf16, #tpu.memory_space<vmem>>, vector<128x128xbf16>
      %cst = arith.constant dense<0.000000e+00> : vector<128x128xf32>
      %33 = tpu.matmul %31, %32, %cst {dimension_numbers = #tpu.dot_dimension_numbers<[1], [0], [0], [1], [0, 0, 1, 1], [], []>} : vector<128x128xbf16>, vector<128x128xbf16>, vector<128x128xf32> -> vector<128x128xf32>
      %c0_14 = arith.constant 0 : index
      %c0_15 = arith.constant 0 : index
      %34 = vector.load %arg13[%c0_14, %c0_15] : memref<1x128xf32, #tpu.memory_space<vmem>>, vector<1x128xf32>
      %35 = vector.broadcast %34 : vector<1x128xf32> to vector<128x128xf32>
      %36 = arith.addf %33, %35 : vector<128x128xf32>
      %cst_16 = arith.constant 0.000000e+00 : f32
      %37 = vector.broadcast %cst_16 : f32 to vector<128x128xf32>
      %38 = arith.maximumf %36, %37 : vector<128x128xf32>
      %39 = arith.truncf %38 : vector<128x128xf32> to vector<128x128xbf16>
      %c0_17 = arith.constant 0 : index
      %c0_18 = arith.constant 0 : index
      %40 = vector.load %arg14[%c0_17, %c0_18] : memref<128x128xbf16, #tpu.memory_space<vmem>>, vector<128x128xbf16>
      %cst_19 = arith.constant dense<0.000000e+00> : vector<128x128xf32>
      %41 = tpu.matmul %39, %40, %cst_19 {dimension_numbers = #tpu.dot_dimension_numbers<[1], [0], [0], [1], [0, 0, 1, 1], [], []>} : vector<128x128xbf16>, vector<128x128xbf16>, vector<128x128xf32> -> vector<128x128xf32>
      %c0_20 = arith.constant 0 : index
      %c0_21 = arith.constant 0 : index
      %42 = vector.load %arg15[%c0_20, %c0_21] : memref<1x128xf32, #tpu.memory_space<vmem>>, vector<1x128xf32>
      %43 = vector.broadcast %42 : vector<1x128xf32> to vector<128x128xf32>
      %44 = arith.addf %41, %43 : vector<128x128xf32>
      %c0_22 = arith.constant 0 : index
      %c0_23 = arith.constant 0 : index
      %45 = vector.load %arg16[%c0_22, %c0_23] : memref<128x128xf32, #tpu.memory_space<vmem>>, vector<128x128xf32>
      tpu.vector_store %arg16[%c0_22, %c0_23], %44 {strides = array<i32>} : memref<128x128xf32, #tpu.memory_space<vmem>>, vector<128x128xf32>,
    } else {
    }
    return
  }
  func.func @transform_0(%arg0: i32, %arg1: i32) -> (i32, i32) {
    %c0_i32 = arith.constant 0 : i32
    %0 = arith.cmpi eq, %arg0, %c0_i32 : i32
    %c0_i32_0 = arith.constant 0 : i32
    %1 = arith.select %0, %arg1, %c0_i32_0 : i32
    %c0_i32_1 = arith.constant 0 : i32
    %c0_i32_2 = arith.constant 0 : i32
    return %1, %c0_i32_1 : i32, i32
  }
  func.func @transform_1(%arg0: i32, %arg1: i32) -> (i32, i32) {
    %c0_i32 = arith.constant 0 : i32
    %c0_i32_0 = arith.constant 0 : i32
    %c0_i32_1 = arith.constant 0 : i32
    return %c0_i32, %c0_i32_0 : i32, i32
  }
  func.func @transform_2(%arg0: i32, %arg1: i32) -> (i32, i32) {
    %c0_i32 = arith.constant 0 : i32
    %c0_i32_0 = arith.constant 0 : i32
    %c0_i32_1 = arith.constant 0 : i32
    return %c0_i32, %c0_i32_0 : i32, i32
  }
  func.func @transform_3(%arg0: i32, %arg1: i32) -> (i32, i32) {
    %c0_i32 = arith.constant 0 : i32
    %c0_i32_0 = arith.constant 0 : i32
    %c0_i32_1 = arith.constant 0 : i32
    return %c0_i32, %c0_i32_0 : i32, i32
  }
  func.func @transform_4(%arg0: i32, %arg1: i32) -> (i32, i32) {
    %c0_i32 = arith.constant 0 : i32
    %c0_i32_0 = arith.constant 0 : i32
    %c0_i32_1 = arith.constant 0 : i32
    return %c0_i32, %c0_i32_0 : i32, i32
  }
  func.func @transform_5(%arg0: i32, %arg1: i32) -> (i32, i32) {
    %c0_i32 = arith.constant 0 : i32
    %c0_i32_0 = arith.constant 0 : i32
    %c0_i32_1 = arith.constant 0 : i32
    return %c0_i32, %c0_i32_0 : i32, i32
  }
  func.func @transform_6(%arg0: i32, %arg1: i32) -> (i32, i32, i32) {
    %c1_i32 = arith.constant 1 : i32
    %0 = arith.subi %arg0, %c1_i32 : i32
    %c2_i32 = arith.constant 2 : i32
    %1 = arith.minsi %0, %c2_i32 : i32
    %c0_i32 = arith.constant 0 : i32
    %2 = arith.maxsi %1, %c0_i32 : i32
    %c0_i32_0 = arith.constant 0 : i32
    %c0_i32_1 = arith.constant 0 : i32
    %c0_i32_2 = arith.constant 0 : i32
    return %2, %c0_i32_0, %c0_i32_1 : i32, i32, i32
  }
  func.func @transform_7(%arg0: i32, %arg1: i32) -> (i32, i32, i32) {
    %c1_i32 = arith.constant 1 : i32
    %0 = arith.subi %arg0, %c1_i32 : i32
    %c2_i32 = arith.constant 2 : i32
    %1 = arith.minsi %0, %c2_i32 : i32
    %c0_i32 = arith.constant 0 : i32
    %2 = arith.maxsi %1, %c0_i32 : i32
    %c0_i32_0 = arith.constant 0 : i32
    %c0_i32_1 = arith.constant 0 : i32
    %c0_i32_2 = arith.constant 0 : i32
    return %2, %c0_i32_0, %c0_i32_1 : i32, i32, i32
  }
  func.func @transform_8(%arg0: i32, %arg1: i32) -> (i32, i32, i32) {
    %c1_i32 = arith.constant 1 : i32
    %0 = arith.subi %arg0, %c1_i32 : i32
    %c2_i32 = arith.constant 2 : i32
    %1 = arith.minsi %0, %c2_i32 : i32
    %c0_i32 = arith.constant 0 : i32
    %2 = arith.maxsi %1, %c0_i32 : i32
    %c0_i32_0 = arith.constant 0 : i32
    %c0_i32_1 = arith.constant 0 : i32
    %c0_i32_2 = arith.constant 0 : i32
    return %2, %c0_i32_0, %c0_i32_1 : i32, i32, i32
  }
  func.func @transform_9(%arg0: i32, %arg1: i32) -> (i32, i32, i32) {
    %c1_i32 = arith.constant 1 : i32
    %0 = arith.subi %arg0, %c1_i32 : i32
    %c2_i32 = arith.constant 2 : i32
    %1 = arith.minsi %0, %c2_i32 : i32
    %c0_i32 = arith.constant 0 : i32
    %2 = arith.maxsi %1, %c0_i32 : i32
    %c0_i32_0 = arith.constant 0 : i32
    %c0_i32_1 = arith.constant 0 : i32
    %c0_i32_2 = arith.constant 0 : i32
    return %2, %c0_i32_0, %c0_i32_1 : i32, i32, i32
  }
  func.func @transform_10(%arg0: i32, %arg1: i32) -> (i32, i32) {
    %c0_i32 = arith.constant 0 : i32
    %c0_i32_0 = arith.constant 0 : i32
    %c0_i32_1 = arith.constant 0 : i32
    return %c0_i32, %c0_i32_0 : i32, i32
  }
  func.func @transform_11(%arg0: i32, %arg1: i32) -> (i32, i32) {
    %c0_i32 = arith.constant 0 : i32
    %c0_i32_0 = arith.constant 0 : i32
    %c0_i32_1 = arith.constant 0 : i32
    return %c0_i32, %c0_i32_0 : i32, i32
  }
  func.func @transform_12(%arg0: i32, %arg1: i32) -> (i32, i32) {
    %c0_i32 = arith.constant 0 : i32
    %c0_i32_0 = arith.constant 0 : i32
    %c0_i32_1 = arith.constant 0 : i32
    return %c0_i32, %c0_i32_0 : i32, i32
  }
  func.func @transform_13(%arg0: i32, %arg1: i32) -> (i32, i32) {
    %c0_i32 = arith.constant 0 : i32
    %c0_i32_0 = arith.constant 0 : i32
    %c0_i32_1 = arith.constant 0 : i32
    return %c0_i32, %c0_i32_0 : i32, i32
  }
  func.func @transform_14(%arg0: i32, %arg1: i32) -> (i32, i32) {
    %c4_i32 = arith.constant 4 : i32
    %0 = arith.cmpi eq, %arg0, %c4_i32 : i32
    %c0_i32 = arith.constant 0 : i32
    %1 = arith.select %0, %arg1, %c0_i32 : i32
    %c0_i32_0 = arith.constant 0 : i32
    %c0_i32_1 = arith.constant 0 : i32
    return %1, %c0_i32_0 : i32, i32
  }
}

</mosaic_0001>

<bundles_post_ra>
// kernel: tpu_custom_call.1
= control target key start
LH: loop header
LB: loop body
LE: loop exit
PB: predicated region body
PF: predicated region fallthrough
CT: control target
= control target key end

     0   :  { %s4884_s0 = inlined_call_operand.hbm [shape: bf16[128,128], index: 0, kind: input, shape index: {}]   ;;  %s4885_s1 = inlined_call_operand.hbm [shape: bf16[128,128], index: 1, kind: input, shape index: {}]   ;;  %s4886_s2 = inlined_call_operand.hbm [shape: bf16[128,128], index: 2, kind: input, shape index: {}]   ;;  %s4887_s3 = inlined_call_operand.vmem [shape: f32[1,128], index: 3, kind: input, shape index: {}]   ;;  %s4888_s4 = inlined_call_operand.hbm [shape: bf16[128,128], index: 4, kind: input, shape index: {}]   ;;  %s4889_s5 = inlined_call_operand.vmem [shape: f32[1,128], index: 5, kind: input, shape index: {}]   ;;  %s4890_s6 = inlined_call_operand.hbm [shape: bf16[3,128,128], index: 6, kind: input, shape index: {}]   ;;  %s4891_s7 = inlined_call_operand.vmem [shape: f32[3,1,128], index: 7, kind: input, shape index: {}]   ;;  %s4892_s8 = inlined_call_operand.hbm [shape: bf16[3,128,128], index: 8, kind: input, shape index: {}]   ;;  %s4893_s9 = inlined_call_operand.vmem [shape: f32[3,1,128], index: 9, kind: input, shape index: {}]   ;;  %s4894_s10 = inlined_call_operand.hbm [shape: bf16[128,128], index: 10, kind: input, shape index: {}]   ;;  %s4895_s11 = inlined_call_operand.vmem [shape: f32[1,128], index: 11, kind: input, shape index: {}]   ;;  %s4896_s12 = inlined_call_operand.hbm [shape: bf16[128,128], index: 12, kind: input, shape index: {}]   ;;  %s4897_s13 = inlined_call_operand.vmem [shape: f32[1,128], index: 13, kind: input, shape index: {}]   ;;  %s4898_s14 = inlined_call_operand.hbm [shape: f32[128,128], index: 14, kind: output, shape index: {}]  }
   0x1   :  { %4923 = sst [smem:[#allocation28_spill]] %s4884_s0 }
   0x2   :  { %4924 = sst [smem:[#allocation29_spill]] %s4885_s1 }
   0x3   :  { %4925 = sst [smem:[#allocation30_spill]] %s4886_s2 }
   0x4   :  { %4926 = sst [smem:[#allocation31_spill]] %s4887_s3 }
   0x5   :  { %4927 = sst [smem:[#allocation32_spill]] %s4888_s4 }
   0x6   :  { %4928 = sst [smem:[#allocation33_spill]] %s4889_s5 }
   0x7   :  { %4929 = sst [smem:[#allocation34_spill]] %s4890_s6 }
   0x8   :  { %4930 = sst [smem:[#allocation35_spill]] %s4891_s7 }
   0x9   :  { %4931 = sst [smem:[#allocation36_spill]] %s4893_s9 }
   0xa   :  { %4932 = sst [smem:[#allocation37_spill]] %s4895_s11 }
   0xb   :  { %4933 = sst [smem:[#allocation38_spill]] %s4897_s13 }
   0xc   :  { %4934 = sst [smem:[#allocation39_spill]] %s4898_s14 }
   0xd   :  { %19 = vsyncpa [#allocation5], 0 }
   0xe   :  { %21 = vsyncpa [#allocation5 + $0x1], 0 }
   0xf   :  { %22 = vsyncpa [#allocation8], 0 }
  0x10   :  { %23 = vsyncpa [#allocation11], 0 }
  0x11   :  { %24 = vsyncpa [#allocation6], 0 }
  0x12   :  { %26 = vsyncpa [#allocation6 + $0x1], 0  ;;  %s4419_s29 = smov 0   ;;  %s4421_s30 = smov 0  }
  0x13   :  { %s4423_s15 = smov 0   ;;  %s4425_s16 = smov 0  }
  0x14   :  { %s4427_s17 = smov 0   ;;  %s4429_s18 = smov 0  }
  0x15 LB: > { %4935 = sst [smem:[#allocation24_spill]] %s4321_s16  ;;  %s4450_s19 = sadd.s32 4294967295, %s4329_s18   ;;  %s4329_s18 = sphi %s4429_s18, %s32_s18   ;;  %s4325_s17 = sphi %s4427_s17, %s4990_s17   ;;  %s4321_s16 = sphi %s4425_s16, %s4989_s16   ;;  %s4317_s15 = sphi %s4423_s15, %s4993_s15   ;;  %s4313_s30 = sphi %s4421_s30, %s4992_s30   ;;  %s4309_s29 = sphi %s4419_s29, %s4991_s29  }
  0x16   : > { %4936 = sst [smem:[#allocation25_spill]] %s4325_s17  ;;  %p4900_p0 = scmp.eq.s32.totalorder %s4450_s19, 0 }
  0x17   : > { %4937 = sst [smem:[#allocation26_spill]] %s4329_s18  ;;  %p3085_p1 = scmp.ge.s32.totalorder %s4329_s18, 1 }
  0x18   : > { %p442_p2 = scmp.lt.s32.totalorder %s4329_s18, 6  ;;  %s4331_s22 = smov [#allocation7]  }
  0x19   : > { %s454_s23 = sshll.u32 %s4331_s22, 4  ;;  %s4940_s1 = sld [smem:[#allocation29_spill]]  ;;  %s455_s23 = int_to_ptr.vmem [resolvable:$true] %s454_s23 }
  0x1a   : > { %p4456_p3 = pnand %p3085_p1, %p442_p2 }
  0x1c   : > { %s4938_s21 = scalar_select %p4456_p3, 1, 0 }
  0x1d   : > { %p3808_p4 = pneg %p4456_p3 }
  0x1f   : > { %p4464_p5 = pnand %p3808_p4, %p4900_p0  ;;  %s4001_s27 = scalar_lea.hbm %s4940_s1, 1024 }
  0x20   : > { %p4002_p6 = scmp.ne.s32.totalorder %s4940_s1, %s4001_s27  ;;  %p4008_p10 = scmp.lt.u32.totalorder %s4001_s27, %s4940_s1 }
  0x21   : > { %s4939_s24 = scalar_select %p4464_p5, 1, 0 }
  0x22   : > { %p4476_p7 = pneg %p4464_p5 }
  0x24   : > { %s4941_s22 = scalar_select %p4476_p7, 1, 0 }
  0x25   : > { %p4004_p8 = pnand %p4476_p7, %p4002_p6 }
  0x27   : > { %p4005_p9 = pneg %p4004_p8 }
  0x29   : > { %p4010_p11 = pnand %p4008_p10, %p4005_p9 }
  0x2b   : > { %4013 = shalt.err (!%p4010_p11)
}
  0x2c   : > { %s4014_s25 = scalar_lea.vmem %s455_s23, 1024  ;;  %p4022_p2 = scmp.lt.s32.totalorder %s455_s23, %s455_s23 }
  0x2d   : > { %p4015_p12 = scmp.ne.s32.totalorder %s455_s23, %s4014_s25  ;;  %p4023_p4 = scmp.lt.s32.totalorder %s4014_s25, %s4014_s25 }
  0x2f   : > { %p4017_p13 = pnand %p4015_p12, %p4476_p7  ;;  %p4024_p0 = por %p4023_p4, %p4022_p2 }
  0x31   : > { %p4018_p1 = pneg %p4017_p13 }
  0x33   : > { %p4025_p3 = pnand %p4024_p0, %p4018_p1 }
  0x35   : > { %4028 = shalt.err (!%p4025_p3)
}
  0x36   : > { %s4902_s20 = smov 64   ;;  %s4904_s13 = smov 4  }
  0x37   : > { %3811 = dma.hbm_to_vmem [thread:$0]  (!%p4464_p5), %s4940_s1, 1024, %s455_s23, [#allocation8], %s4902_s20, %s4902_s20, %s4904_s13  }
  0x38   : > { %p203_p0 = scmp.ne.s32.totalorder %s4317_s15, %s4313_s30  ;;  %p204_p3 = scmp.eq.s32.totalorder %s4329_s18, 0 }
  0x39   : > { %p209_p6 = scmp.ne.s32.totalorder %s4313_s30, %s4309_s29  ;;  %p3843_p8 = scmp.lt.s32.totalorder %s4329_s18, 5 }
  0x3a   : > { %s532_s27 = sand.u32 1, %s4329_s18   ;;  %p205_p9 = por %p204_p3, %p203_p0 }
  0x3b   : > { %p4942_p10 = scmp.eq.s32.totalorder %s4450_s19, 0  ;;  %s4334_s25 = smov [#allocation4]  }
  0x3c   : > { %s545_s11 = sshll.u32 %s4334_s25, 4  ;;  %p4508_p12 = pnand %p3843_p8, %p204_p3  ;;  %s546_s11 = int_to_ptr.vmem [resolvable:$true] %s545_s11 }
  0x3d   : > { %p4504_p11 = por %p4942_p10, %p209_p6  ;;  %p4512_p13 = pnand %p3843_p8, %p205_p9 }
  0x3e   : > { %s4516_s29 = scalar_lea.sflag [#allocation5], %s532_s27  ;;  %s4946_s0 = sld [smem:[#allocation28_spill]] }
  0x3f   : > { %s4943_s28 = scalar_select %p4504_p11, 1, 0 }
  0x40   : > { %s4945_s23 = scalar_select %p4512_p13, 1, 0 }
  0x41   : > { %p4031_p2 = pneg %p4508_p12 }
  0x44   : > { %s4029_s20 = scalar_lea.hbm %s4946_s0, 1024 }
  0x45   : > { %p4030_p1 = scmp.ne.s32.totalorder %s4946_s0, %s4029_s20  ;;  %p4036_p3 = scmp.lt.u32.totalorder %s4029_s20, %s4946_s0 }
  0x47   : > { %p4032_p4 = pnand %p4031_p2, %p4030_p1 }
  0x49   : > { %p4033_p0 = pneg %p4032_p4 }
  0x4b   : > { %p4038_p6 = pnand %p4036_p3, %p4033_p0 }
  0x4d   : > { %4041 = shalt.err (!%p4038_p6)
}
  0x4e   : > { %s4042_s27 = scalar_lea.vmem %s546_s11, 1024  ;;  %s4049_s14 = scalar_lea.vmem %s546_s11, 2048 }
  0x4f   : > { %p4043_p8 = scmp.ne.s32.totalorder %s546_s11, %s4042_s27  ;;  %p4050_p11 = scmp.lt.s32.totalorder %s546_s11, %s546_s11 }
  0x50   : > { %p4051_p13 = scmp.lt.s32.totalorder %s4049_s14, %s4042_s27 }
  0x51   : > { %p4045_p9 = pnand %p4043_p8, %p4031_p2 }
  0x52   : > { %p4052_p5 = por %p4051_p13, %p4050_p11 }
  0x53   : > { %p4046_p10 = pneg %p4045_p9 }
  0x55   : > { %p4053_p7 = pnand %p4052_p5, %p4046_p10 }
  0x57   : > { %4056 = shalt.err (!%p4053_p7)
}
  0x58   : > { %s4947_s1 = smov 4   ;;  %s4948_s13 = smov 64  }
  0x59   : > { %3827 = dma.hbm_to_vmem [thread:$0]  (!%p4508_p12), %s4946_s0, 1024, %s546_s11, %s4516_s29, %s4948_s13, %s4948_s13, %s4947_s1  }
  0x5a   : > { %s4335_s26 = smov [#allocation9]   ;;  %s4949_s2 = sld [smem:[#allocation30_spill]] }
  0x5b   : > { %s467_s25 = sshll.u32 %s4335_s26, 4  ;;  %p4950_p7 = scmp.ne.s32.totalorder %s4941_s22, 0  ;;  %s468_s25 = int_to_ptr.vmem [resolvable:$true] %s467_s25 }
  0x60   : > { %s4057_s27 = scalar_lea.hbm %s4949_s2, 1024 }
  0x61   : > { %p4058_p5 = scmp.ne.s32.totalorder %s4949_s2, %s4057_s27  ;;  %p4064_p1 = scmp.lt.u32.totalorder %s4057_s27, %s4949_s2 }
  0x63   : > { %p4060_p11 = pnand %p4058_p5, %p4950_p7 }
  0x65   : > { %p4061_p13 = pneg %p4060_p11 }
  0x67   : > { %p4066_p2 = pnand %p4064_p1, %p4061_p13 }
  0x69   : > { %4069 = shalt.err (!%p4066_p2)
}
  0x6a   : > { %s4070_s11 = scalar_lea.vmem %s468_s25, 1024  ;;  %p4078_p3 = scmp.lt.s32.totalorder %s468_s25, %s468_s25 }
  0x6b   : > { %p4071_p12 = scmp.ne.s32.totalorder %s468_s25, %s4070_s11  ;;  %p4079_p6 = scmp.lt.s32.totalorder %s4070_s11, %s4070_s11 }
  0x6d   : > { %p4073_p4 = pnand %p4071_p12, %p4950_p7  ;;  %p4080_p8 = por %p4079_p6, %p4078_p3 }
  0x6f   : > { %p4074_p0 = pneg %p4073_p4 }
  0x71   : > { %p4081_p9 = pnand %p4080_p8, %p4074_p0 }
  0x73   : > { %4084 = shalt.err (!%p4081_p9)
}
  0x74   : > { %p4951_p10 = scmp.ne.s32.totalorder %s4939_s24, 0  ;;  %s4336_s9 = smov [#allocation10]  }
  0x75   : > { %s483_s16 = sshll.u32 %s4336_s9, 4  ;;  %s4952_s4 = sld [smem:[#allocation32_spill]]  ;;  %s484_s16 = int_to_ptr.vmem [resolvable:$true] %s483_s16 }
  0x76   : > { %3814 = dma.hbm_to_vmem [thread:$0]  (!%p4951_p10), %s4949_s2, 1024, %s468_s25, [#allocation8], %s4948_s13, %s4948_s13, %s4947_s1  }
  0x7b   : > { %s4085_s26 = scalar_lea.hbm %s4952_s4, 1024 }
  0x7c   : > { %p4086_p5 = scmp.ne.s32.totalorder %s4952_s4, %s4085_s26  ;;  %p4092_p1 = scmp.lt.u32.totalorder %s4085_s26, %s4952_s4 }
  0x7e   : > { %p4088_p11 = pnand %p4086_p5, %p4950_p7 }
  0x80   : > { %p4089_p13 = pneg %p4088_p11 }
  0x82   : > { %p4094_p2 = pnand %p4092_p1, %p4089_p13 }
  0x84   : > { %4097 = shalt.err (!%p4094_p2)
}
  0x85   : > { %s4098_s25 = scalar_lea.vmem %s484_s16, 1024  ;;  %p4106_p3 = scmp.lt.s32.totalorder %s484_s16, %s484_s16 }
  0x86   : > { %p4099_p12 = scmp.ne.s32.totalorder %s484_s16, %s4098_s25  ;;  %p4107_p6 = scmp.lt.s32.totalorder %s4098_s25, %s4098_s25 }
  0x88   : > { %p4101_p4 = pnand %p4099_p12, %p4950_p7  ;;  %p4108_p8 = por %p4107_p6, %p4106_p3 }
  0x8a   : > { %p4102_p0 = pneg %p4101_p4 }
  0x8c   : > { %p4109_p9 = pnand %p4108_p8, %p4102_p0 }
  0x8e   : > { %4112 = shalt.err (!%p4109_p9)
}
  0x8f   : > { %3817 = dma.hbm_to_vmem [thread:$0]  (!%p4951_p10), %s4952_s4, 1024, %s484_s16, [#allocation11], %s4948_s13, %s4948_s13, %s4947_s1  }
  0x90   : > { %s44_s9 = sadd.s32 1, %s4325_s17  ;;  %s3037_s18 = sadd.s32 4294967295, %s4325_s17 }
  0x91   : > { %p46_p5 = scmp.ge.s32.totalorder %s44_s9, 5  ;;  %p184_p11 = scmp.lt.s32.totalorder %s3037_s18, 2 }
  0x92   : > { %p3038_p13 = scmp.gt.s32.totalorder %s3037_s18, 0  ;;  %s557_s27 = sand.u32 1, %s4317_s15  }
  0x93   : > { %s4995_s9 = smov (%p46_p5, %s44_s9), 0  ;;  %s4997_s18 = smov (!%p184_p11, %s3037_s18), 2 }
  0x94   : > { %4953 = sst [smem:[#allocation27_spill]] %s4995_s9  ;;  %s3043_s26 = sadd.s32 4294967295, %s4995_s9 }
  0x95   : > { %s4999_s18 = smov (!%p3038_p13, %s4997_s18), 0  ;;  %p189_p1 = scmp.lt.s32.totalorder %s3043_s26, 2 }
  0x96   : > { %p3044_p2 = scmp.gt.s32.totalorder %s3043_s26, 0  ;;  %s4589_s16 = sshll.u32 %s557_s27, 6 }
  0x97   : > { %s4916_s14 = sshll.u32 %s4999_s18, 10  ;;  %s5001_s26 = smov (!%p189_p1, %s3043_s26), 2 }
  0x98   : > { %s4954_s6 = sld [smem:[#allocation34_spill]]  ;;  %s5003_s26 = smov (!%p3044_p2, %s5001_s26), 0 }
  0x99   : > { %s559_s3 = scalar_lea.vmem [#allocation12], %s4589_s16  ;;  %s193_s20 = ssub.s32 %s4999_s18, %s5003_s26 }
  0x9a   : > { %s571_s7 = sshll.u32 %s559_s3, 4  ;;  %p4603_p12 = scmp.eq.s32.totalorder %s193_s20, 0  ;;  %s4601_s7 = int_to_ptr.vmem [resolvable:$true] %s571_s7 }
  0x9b   : > { %s4337_s0 = smov [#allocation14]   ;;  %p4956_p0 = scmp.ne.s32.totalorder %s4945_s23, 0 }
  0x9c   : > { %s4607_s2 = sshll.u32 %s4337_s0, 4  ;;  %s500_s2 = int_to_ptr.vmem [resolvable:$true] %s4607_s2 }
  0x9d   : > { %p4919_p3 = pneg %p4956_p0 }
  0x9e   : > { %s4597_s25 = scalar_lea.hbm %s4954_s6, %s4916_s14  ;;  %s4118_s26 = scalar_lea.hbm %s4954_s6, 3072 }
  0x9f   : > { %s4113_s5 = scalar_lea.hbm %s4597_s25, 1024  ;;  %p4119_p9 = scmp.lt.u32.totalorder %s4597_s25, %s4954_s6 }
  0xa0   : > { %p4114_p4 = scmp.ne.s32.totalorder %s4597_s25, %s4113_s5  ;;  %p4120_p5 = scmp.lt.u32.totalorder %s4118_s26, %s4113_s5 }
  0xa1   : > { %p4122_p13 = scmp.lt.u32.totalorder %s4113_s5, %s4597_s25 }
  0xa2   : > { %p4116_p6 = pnand %p4919_p3, %p4114_p4  ;;  %p4121_p11 = por %p4120_p5, %p4119_p9 }
  0xa4   : > { %p4117_p8 = pneg %p4116_p6  ;;  %p4123_p1 = por %p4122_p13, %p4121_p11 }
  0xa6   : > { %p4124_p2 = pnand %p4123_p1, %p4117_p8 }
  0xa8   : > { %4127 = shalt.err (!%p4124_p2)
}
  0xa9   : > { %s4128_s0 = scalar_lea.vmem %s4601_s7, 1024  ;;  %s4338_s11 = smov [#allocation12]  }
  0xaa   : > { %p4129_p4 = scmp.ne.s32.totalorder %s4601_s7, %s4128_s0  ;;  %s4133_s3 = sshll.u32 %s4338_s11, 4  ;;  %s4134_s3 = int_to_ptr.vmem [resolvable:$false] %s4133_s3 }
  0xab   : > { %s4135_s14 = scalar_lea.vmem %s4134_s3, 2048  ;;  %p4136_p7 = scmp.lt.s32.totalorder %s4601_s7, %s4134_s3 }
  0xac   : > { %p4131_p6 = pnand %p4129_p4, %p4919_p3  ;;  %p4137_p9 = scmp.lt.s32.totalorder %s4135_s14, %s4128_s0 }
  0xae   : > { %p4132_p10 = pneg %p4131_p6  ;;  %p4138_p5 = por %p4137_p9, %p4136_p7 }
  0xb0   : > { %p4139_p11 = pnand %p4138_p5, %p4132_p10 }
  0xb2   : > { %4142 = shalt.err (!%p4139_p11)
}
  0xb3   : > { %3830 = dma.hbm_to_vmem [thread:$0]  (!%p4956_p0), %s4597_s25, 1024, %s4601_s7, %s4516_s29, %s4948_s13, %s4948_s13, %s4947_s1  }
  0xb4   : > { %s4957_s5 = sadd.s32 1, %s4317_s15  ;;  %s4143_s11 = scalar_lea.hbm %s4894_s10, 1024 }
  0xb5   : > { %s4643_s26 = scalar_select %p4603_p12, %s4317_s15, %s4957_s5  }
  0xb6   : > { %p4144_p7 = scmp.ne.s32.totalorder %s4894_s10, %s4143_s11  ;;  %p4958_p10 = scmp.ne.s32.totalorder %s4941_s22, 0 }
  0xb7   : > { %p4150_p1 = scmp.lt.u32.totalorder %s4143_s11, %s4894_s10 }
  0xb8   : > { %p4146_p8 = pnand %p4144_p7, %p4958_p10 }
  0xba   : > { %p4147_p13 = pneg %p4146_p8 }
  0xbc   : > { %p4152_p2 = pnand %p4150_p1, %p4147_p13 }
  0xbe   : > { %4155 = shalt.err (!%p4152_p2)
}
  0xbf   : > { %s4156_s25 = scalar_lea.vmem %s500_s2, 1024  ;;  %p4164_p9 = scmp.lt.s32.totalorder %s500_s2, %s500_s2 }
  0xc0   : > { %p4157_p12 = scmp.ne.s32.totalorder %s500_s2, %s4156_s25  ;;  %p4165_p5 = scmp.lt.s32.totalorder %s4156_s25, %s4156_s25 }
  0xc2   : > { %p4159_p4 = pnand %p4157_p12, %p4958_p10  ;;  %p4166_p11 = por %p4165_p5, %p4164_p9 }
  0xc4   : > { %p4160_p6 = pneg %p4159_p4 }
  0xc6   : > { %p4167_p3 = pnand %p4166_p11, %p4160_p6 }
  0xc8   : > { %4170 = shalt.err (!%p4167_p3)
}
  0xc9   : > { %p4959_p7 = scmp.ne.s32.totalorder %s4939_s24, 0  ;;  %s4339_s7 = smov [#allocation15]  }
  0xca   : > { %s515_s27 = sshll.u32 %s4339_s7, 4  ;;  %s4960_s5 = sshll.u32 %s4999_s18, 10  ;;  %s516_s27 = int_to_ptr.vmem [resolvable:$true] %s515_s27 }
  0xcb   : > { %3820 = dma.hbm_to_vmem [thread:$0]  (!%p4959_p7), %s4894_s10, 1024, %s500_s2, [#allocation8], %s4948_s13, %s4948_s13, %s4947_s1  }
  0xcc   : > { %s4672_s11 = scalar_lea.hbm %s4892_s8, %s4960_s5  ;;  %s4171_s25 = scalar_lea.hbm %s4896_s12, 1024 }
  0xcd   : > { %p4172_p3 = scmp.ne.s32.totalorder %s4896_s12, %s4171_s25  ;;  %p4178_p1 = scmp.lt.u32.totalorder %s4171_s25, %s4896_s12 }
  0xcf   : > { %p4174_p8 = pnand %p4172_p3, %p4958_p10 }
  0xd1   : > { %p4175_p13 = pneg %p4174_p8 }
  0xd3   : > { %p4180_p2 = pnand %p4178_p1, %p4175_p13 }
  0xd5   : > { %4183 = shalt.err (!%p4180_p2)
}
  0xd6   : > { %s4184_s18 = scalar_lea.vmem %s516_s27, 1024  ;;  %p4192_p9 = scmp.lt.s32.totalorder %s516_s27, %s516_s27 }
  0xd7   : > { %p4185_p12 = scmp.ne.s32.totalorder %s516_s27, %s4184_s18  ;;  %p4193_p5 = scmp.lt.s32.totalorder %s4184_s18, %s4184_s18 }
  0xd9   : > { %p4187_p4 = pnand %p4185_p12, %p4958_p10  ;;  %p4194_p11 = por %p4193_p5, %p4192_p9 }
  0xdb   : > { %p4188_p6 = pneg %p4187_p4 }
  0xdd   : > { %p4195_p0 = pnand %p4194_p11, %p4188_p6 }
  0xdf   : > { %4198 = shalt.err (!%p4195_p0)
}
  0xe0   : > { %3823 = dma.hbm_to_vmem [thread:$0]  (!%p4959_p7), %s4896_s12, 1024, %s516_s27, [#allocation11], %s4948_s13, %s4948_s13, %s4947_s1  }
  0xe1   : > { %s601_s22 = scalar_lea.vmem [#allocation13], %s4589_s16  ;;  %s4199_s7 = scalar_lea.hbm %s4672_s11, 1024 }
  0xe2   : > { %s613_s6 = sshll.u32 %s601_s22, 4  ;;  %p4200_p0 = scmp.ne.s32.totalorder %s4672_s11, %s4199_s7  ;;  %s4696_s6 = int_to_ptr.vmem [resolvable:$true] %s613_s6 }
  0xe3   : > { %p4961_p10 = scmp.ne.s32.totalorder %s4945_s23, 0  ;;  %s4204_s20 = scalar_lea.hbm %s4892_s8, 3072 }
  0xe4   : > { %p4205_p1 = scmp.lt.u32.totalorder %s4672_s11, %s4892_s8  ;;  %p4206_p2 = scmp.lt.u32.totalorder %s4204_s20, %s4199_s7 }
  0xe5   : > { %p4962_p3 = pneg %p4961_p10  ;;  %p4208_p12 = scmp.lt.u32.totalorder %s4199_s7, %s4672_s11 }
  0xe6   : > { %p4207_p7 = por %p4206_p2, %p4205_p1 }
  0xe7   : > { %p4202_p8 = pnand %p4200_p0, %p4962_p3 }
  0xe8   : > { %p4209_p4 = por %p4208_p12, %p4207_p7 }
  0xe9   : > { %p4203_p13 = pneg %p4202_p8 }
  0xeb   : > { %p4210_p6 = pnand %p4209_p4, %p4203_p13 }
  0xed   : > { %4213 = shalt.err (!%p4210_p6)
}
  0xee   : > { %s4214_s16 = scalar_lea.vmem %s4696_s6, 1024  ;;  %p4963_p5 = pmov %p4962_p3 }
  0xef   : > { %p4215_p9 = scmp.ne.s32.totalorder %s4696_s6, %s4214_s16  ;;  %s4340_s27 = smov [#allocation13]  }
  0xf0   : > { %s4219_s14 = sshll.u32 %s4340_s27, 4  ;;  %s4220_s14 = int_to_ptr.vmem [resolvable:$false] %s4219_s14 }
  0xf1   : > { %p4217_p11 = pnand %p4215_p9, %p4963_p5  ;;  %s4221_s25 = scalar_lea.vmem %s4220_s14, 2048 }
  0xf2   : > { %p4222_p3 = scmp.lt.s32.totalorder %s4696_s6, %s4220_s14  ;;  %p4223_p8 = scmp.lt.s32.totalorder %s4221_s25, %s4214_s16 }
  0xf3   : > { %p4218_p0 = pneg %p4217_p11 }
  0xf4   : > { %p4224_p1 = por %p4223_p8, %p4222_p3 }
  0xf6   : > { %p4225_p2 = pnand %p4224_p1, %p4218_p0 }
  0xf8   : > { %4228 = shalt.err (!%p4225_p2)
}
  0xf9   : > { %3833 = dma.hbm_to_vmem [thread:$0]  (!%p4961_p10), %s4672_s11, 1024, %s4696_s6, %s4516_s29, %s4948_s13, %s4948_s13, %s4947_s1  }
  0xfa   : > { %p4964_p13 = scmp.ne.s32.totalorder %s4938_s21, 0 }
  0xfb   : > { %s643_s2 = sand.u32 (!%p4964_p13), 1, %s4450_s19   ;;  %p4965_p7 = scmp.eq.s32.totalorder (!%p4964_p13), %s4450_s19, 0 }
  0xfc   : > { %641 = sbr.rel (%p4964_p13) target bundleno = 2771 (0xad3), region = 76  ;;  %s644_s4 = scalar_lea.sflag (!%p4964_p13), [#allocation5], %s643_s2 }
 0x103   : > { %4280 = dma.done.wait (%p4965_p7), %s644_s4, 1024   ;;  %p4966_p12 = pmov %p4965_p7 }
 0x104   : > { %p4967_p4 = pmov %p4965_p7 }
 0x105   : > { %4282 = vsyncadd (%p4966_p12), %s644_s4, 4294966272 }
 0x106   : > { %4284 = dma.done.wait (%p4967_p4), [#allocation8], 2048   ;;  %p4968_p6 = pmov %p4967_p4 }
 0x107   : > { %p4969_p10 = pmov %p4967_p4 }
 0x108   : > { %4286 = vsyncadd (%p4968_p6), [#allocation8], 4294965248 }
 0x109   : > { %4288 = dma.done.wait (%p4969_p10), [#allocation11], 1024   ;;  %p4970_p9 = pmov %p4967_p4 }
 0x10a   : > { %s666_s21 = sand.u32 1, %s4313_s30   ;;  %p4971_p5 = scmp.ne.s32.totalorder %s4943_s28, 0 }
 0x10b   : > { %4290 = vsyncadd (%p4970_p9), [#allocation11], 4294966272  ;;  %s3116_s23 = sshll.u32 %s666_s21, 6 }
 0x10c   : > { %s4741_s29 = scalar_lea.vmem [#allocation12], %s3116_s23 }
 0x10d   : > { %4292 = dma.done.wait (%p4971_p5), %s644_s4, 2048  }
 0x10e   : > { %4294 = vsyncadd (%p4971_p5), %s644_s4, 4294965248  ;;  %s4747_s1 = scalar_lea.vmem [#allocation13], %s3116_s23  ;;  %p4972_p11 = pmov %p4967_p4 }
 0x10f   : > { %p4973_p0 = pmov %p4967_p4 }
 0x110   : > { %4296 = dma.done.wait (%p4972_p11), [#allocation8], 1024  }
 0x111   : > { %4298 = vsyncadd (%p4973_p0), [#allocation8], 4294966272  ;;  %p4974_p3 = pmov %p4973_p0 }
 0x112   : > { %p4975_p8 = pmov %p4973_p0 }
 0x113   : > { %4300 = dma.done.wait (%p4974_p3), [#allocation11], 1024  }
 0x114   : > { %4302 = vsyncadd (%p4975_p8), [#allocation11], 4294966272  ;;  %s4976_s13 = sld [smem:[#allocation24_spill]]  ;;  %s4977_s9 = sld [smem:[#allocation35_spill]] }
 0x115   : > { %s4978_s24 = sld [smem:[#allocation36_spill]] }
 0x11a   : > { %s4758_s11 = sadd.s32 4294967295, %s4976_s13  ;;  %p3132_p7 = scmp.ne.s32.totalorder %s4976_s13, 0 }
 0x11b   : > { %p765_p1 = scmp.lt.s32.totalorder %s4758_s11, 2  ;;  %p3121_p2 = scmp.gt.s32.totalorder %s4758_s11, 0  ;;  %v3913_v0 = vld [vmem:[#allocation9] sm:$0xff] (!%p3132_p7)   ;;  %v3914_v1 = vld [vmem:[#allocation9 + $0x8] sm:$0xff] (!%p3132_p7)   ;;  %v3915_v2 = vld [vmem:[#allocation9 + $0x10] sm:$0xff] (!%p3132_p7)  }
 0x11c   : > { %3424 = vmatprep.subr.bf16.mxu0 (!%p3132_p7), %v3913_v0  ;;  %v3916_v3 = vld [vmem:[#allocation9 + $0x18] sm:$0xff] (!%p3132_p7)   ;;  %v3921_v4 = vld [vmem:[#allocation4] sm:$0xff] (!%p3132_p7)   ;;  %v3918_v6 = vld [vmem:[#allocation9 + $0x28] sm:$0xff] (!%p3132_p7)   ;;  %s4979_s3 = sld [smem:[#allocation31_spill]] (!%p3132_p7)  ;;  %s4980_s14 = sld [smem:[#allocation33_spill]] (!%p3132_p7) }
 0x11d   : > { %s766_s28 = scalar_select %p765_p1, %s4758_s11, 2 }
 0x11e   : > { %803 = sbr.rel (%p3132_p7) target bundleno = 783 (0x30f), region = 112  ;;  %3425 = vmatpush3.bf16.msra.mxu0 (!%p3132_p7), %v3913_v0  ;;  %3440 = vmatprep.mubr.bf16.mxu0 (!%p3132_p7), %v3921_v4  ;;  %v3917_v5 = vld [vmem:[#allocation9 + $0x20] sm:$0xff] (!%p3132_p7)   ;;  %v3930_v8 = vld [vmem:[#allocation10 + $0x8] sm:$0xff] (!%p3132_p7)   ;;  %v3919_v9 = vld [vmem:[#allocation9 + $0x30] sm:$0xff] (!%p3132_p7)  }
 0x11f   : > { %s5005_s28 = smov (!%p3121_p2, %s766_s28), 0  ;;  %3426 = vmatprep.subr.bf16.mxu0 (!%p3132_p7), %v3914_v1  ;;  %v3929_v7 = vld [vmem:[#allocation10] sm:$0xff] (!%p3132_p7)   ;;  %v3931_v10 = vld [vmem:[#allocation10 + $0x10] sm:$0xff] (!%p3132_p7)   ;;  %v3920_v11 = vld [vmem:[#allocation9 + $0x38] sm:$0xff] (!%p3132_p7)  }
 0x120   : > { %p769_p13 = scmp.lt.s32.totalorder %s5005_s28, 2  ;;  %3456 = vmatprep.subr.bf16.mxu1 (!%p3132_p7), %v3929_v7  ;;  %v3932_v12 = vld [vmem:[#allocation10 + $0x18] sm:$0xff] (!%p3132_p7)   ;;  %v3933_v13 = vld [vmem:[#allocation10 + $0x20] sm:$0xff] (!%p3132_p7)   ;;  %v3922_v14 = vld [vmem:[#allocation4 + $0x8] sm:$0xff] (!%p3132_p7)  }
 0x121   : > { %3457 = vmatpush3.bf16.msra.mxu1 (!%p3132_p7), %v3929_v7  ;;  %v3923_v15 = vld [vmem:[#allocation4 + $0x10] sm:$0xff] (!%p3132_p7)   ;;  %v3934_v16 = vld [vmem:[#allocation10 + $0x28] sm:$0xff] (!%p3132_p7)   ;;  %v3924_v17 = vld [vmem:[#allocation4 + $0x18] sm:$0xff] (!%p3132_p7)  }
 0x122   : > { %s5007_s28 = smov (!%p769_p13, %s5005_s28), 2  ;;  %3427 = vmatpush3.bf16.msra.mxu0 (!%p3132_p7), %v3914_v1  ;;  %3458 = vmatprep.subr.bf16.mxu1 (!%p3132_p7), %v3930_v8  ;;  %v3925_v18 = vld [vmem:[#allocation4 + $0x20] sm:$0xff] (!%p3132_p7)   ;;  %v3926_v19 = vld [vmem:[#allocation4 + $0x28] sm:$0xff] (!%p3132_p7)   ;;  %v3927_v20 = vld [vmem:[#allocation4 + $0x30] sm:$0xff] (!%p3132_p7)  }
 0x123   : > { %s4766_s22 = scalar_lea.vmem %s4977_s9, %s5007_s28  ;;  %s4771_s5 = scalar_lea.vmem %s4978_s24, %s5007_s28  ;;  %3428 = vmatprep.subr.bf16.mxu0 (!%p3132_p7), %v3915_v2  ;;  %v3928_v21 = vld [vmem:[#allocation4 + $0x38] sm:$0xff] (!%p3132_p7)   ;;  %v3935_v22 = vld [vmem:[#allocation10 + $0x30] sm:$0xff] (!%p3132_p7)   ;;  %v3133_v24 = vld [vmem:[%s4979_s3] ss:$0 sm:$0xff] (!%p3132_p7) }
 0x124   : > { %v3936_v23 = vld [vmem:[#allocation10 + $0x38] sm:$0xff] (!%p3132_p7)  }
 0x125   : > { %3459 = vmatpush3.bf16.msra.mxu1 %v3930_v8 }
 0x126   : > { %3429 = vmatpush3.bf16.msra.mxu0 %v3915_v2  ;;  %3460 = vmatprep.subr.bf16.mxu1 %v3931_v10 }
 0x127   : > { %3430 = vmatprep.subr.bf16.mxu0 %v3916_v3 }
 0x129   : > { %3461 = vmatpush3.bf16.msra.mxu1 %v3931_v10 }
 0x12a   : > { %3431 = vmatpush3.bf16.msra.mxu0 %v3916_v3  ;;  %3462 = vmatprep.subr.bf16.mxu1 %v3932_v12 }
 0x12b   : > { %3432 = vmatprep.subr.bf16.mxu0 %v3917_v5 }
 0x12d   : > { %3463 = vmatpush3.bf16.msra.mxu1 %v3932_v12 }
 0x12e   : > { %3433 = vmatpush3.bf16.msra.mxu0 %v3917_v5  ;;  %3464 = vmatprep.subr.bf16.mxu1 %v3933_v13 }
 0x12f   : > { %3434 = vmatprep.subr.bf16.mxu0 %v3918_v6 }
 0x131   : > { %3465 = vmatpush3.bf16.msra.mxu1 %v3933_v13 }
 0x132   : > { %3435 = vmatpush3.bf16.msra.mxu0 %v3918_v6  ;;  %3466 = vmatprep.subr.bf16.mxu1 %v3934_v16 }
 0x133   : > { %3436 = vmatprep.subr.bf16.mxu0 %v3919_v9 }
 0x135   : > { %3467 = vmatpush3.bf16.msra.mxu1 %v3934_v16 }
 0x136   : > { %3437 = vmatpush3.bf16.msra.mxu0 %v3919_v9  ;;  %3468 = vmatprep.subr.bf16.mxu1 %v3935_v22 }
 0x137   : > { %3438 = vmatprep.subr.bf16.mxu0 %v3920_v11 }
 0x139   : > { %3469 = vmatpush3.bf16.msra.mxu1 %v3935_v22 }
 0x13a   : > { %3439 = vmatpush3.bf16.msra.mxu0 %v3920_v11  ;;  %3470 = vmatprep.subr.bf16.mxu1 %v3936_v23 }
 0x13d   : > { %3441 = vmatmul.mubr.bf16.vlgmr.msra.gmra.mrb[0].mxu0 %v3922_v14  ;;  %3471 = vmatpush3.bf16.msra.mxu1 %v3936_v23 }
 0x13e   : > { %3444 = vmatprep.mubr.bf16.mxu0 %v3923_v15 }
 0x145   : > { %3445 = vmatmul.mubr.bf16.gmra.mrb[4].mxu0 %v3924_v17 }
 0x146   : > { %3448 = vmatprep.mubr.bf16.mxu0 %v3925_v18  ;;  %v3150_v18 = vld [vmem:[%s4980_s14] ss:$0 sm:$0xff] }
 0x14d   : > { %3449 = vmatmul.mubr.bf16.gmra.mrb[8].mxu0 %v3926_v19 }
 0x14e   : > { %3452 = vmatprep.mubr.bf16.mxu0 %v3927_v20 }
 0x155   : > { %3453 = vmatmul.mubr.bf16.gmra.mrb[12].mxu0 %v3928_v21 }
 0x210   : > { %v3442_v25 = vpop.f32.mrb[0].mxu0 }
 0x211   : > { %v982_v26 = vadd.f32 %v3442_v25, %v3133_v24  ;;  %v973_v27 = vpop.f32.mrb[1].mxu0 }
 0x212   : > { %v974_v28 = vadd.f32 %v3133_v24, %v973_v27  ;;  %v3443_v29 = vpop.f32.mrb[2].mxu0 }
 0x213   : > { %v985_v30 = vadd.f32 %v3443_v29, %v3133_v24  ;;  %v976_v31 = vpop.f32.mrb[3].mxu0  ;;  %v1038_v33 = vmax.f32 %v982_v26, 0.0 }
 0x214   : > { %v977_v32 = vadd.f32 %v3133_v24, %v976_v31  ;;  %v1036_v35 = vmax.f32 %v974_v28, 0.0 }
 0x215   : > { %v1039_v34 = vmax.f32 %v985_v30, 0.0 }
 0x216   : > { %v1037_v36 = vmax.f32 %v977_v32, 0.0 }
 0x217   : > { %v1053_v37 = vpack.c.bf16 %v1039_v34, %v1038_v33 }
 0x218   : > { %v3446_v38 = vpop.f32.mrb[4].mxu0  ;;  %v1052_v39 = vpack.c.bf16 %v1037_v36, %v1036_v35 }
 0x219   : > { %v998_v40 = vadd.f32 %v3446_v38, %v3133_v24  ;;  %v989_v41 = vpop.f32.mrb[5].mxu0 }
 0x21a   : > { %v990_v42 = vadd.f32 %v3133_v24, %v989_v41  ;;  %v3447_v43 = vpop.f32.mrb[6].mxu0  ;;  %3472 = vmatprep.mubr.bf16.mxu1 %v1052_v39 }
 0x21b   : > { %v1001_v44 = vadd.f32 %v3447_v43, %v3133_v24  ;;  %v992_v45 = vpop.f32.mrb[7].mxu0  ;;  %3473 = vmatmul.mubr.bf16.vlgmr.msra.gmra.mrb[0].mxu1 %v1053_v37  ;;  %v1042_v47 = vmax.f32 %v998_v40, 0.0 }
 0x21c   : > { %v993_v46 = vadd.f32 %v3133_v24, %v992_v45  ;;  %v1040_v49 = vmax.f32 %v990_v42, 0.0 }
 0x21d   : > { %v1043_v48 = vmax.f32 %v1001_v44, 0.0 }
 0x21e   : > { %v1041_v50 = vmax.f32 %v993_v46, 0.0 }
 0x21f   : > { %v1055_v51 = vpack.c.bf16 %v1043_v48, %v1042_v47 }
 0x220   : > { %v1054_v52 = vpack.c.bf16 %v1041_v50, %v1040_v49  ;;  %v3450_v53 = vpop.f32.mrb[8].mxu0 }
 0x221   : > { %v1014_v54 = vadd.f32 %v3450_v53, %v3133_v24  ;;  %v1005_v55 = vpop.f32.mrb[9].mxu0 }
 0x222   : > { %v1006_v56 = vadd.f32 %v3133_v24, %v1005_v55  ;;  %v3451_v57 = vpop.f32.mrb[10].mxu0  ;;  %3476 = vmatprep.mubr.bf16.mxu1 %v1054_v52 }
 0x223   : > { %v1017_v58 = vadd.f32 %v3451_v57, %v3133_v24  ;;  %v1008_v59 = vpop.f32.mrb[11].mxu0  ;;  %3477 = vmatmul.mubr.bf16.gmra.mrb[4].mxu1 %v1055_v51  ;;  %v1046_v61 = vmax.f32 %v1014_v54, 0.0 }
 0x224   : > { %v1009_v60 = vadd.f32 %v3133_v24, %v1008_v59  ;;  %v1044_v63 = vmax.f32 %v1006_v56, 0.0 }
 0x225   : > { %v1047_v62 = vmax.f32 %v1017_v58, 0.0 }
 0x226   : > { %v1045_v0 = vmax.f32 %v1009_v60, 0.0 }
 0x227   : > { %v1057_v1 = vpack.c.bf16 %v1047_v62, %v1046_v61 }
 0x228   : > { %v1056_v2 = vpack.c.bf16 %v1045_v0, %v1044_v63  ;;  %v3454_v3 = vpop.f32.mrb[12].mxu0 }
 0x229   : > { %v1030_v4 = vadd.f32 %v3454_v3, %v3133_v24  ;;  %v1021_v5 = vpop.f32.mrb[13].mxu0 }
 0x22a   : > { %v1022_v6 = vadd.f32 %v3133_v24, %v1021_v5  ;;  %v3455_v7 = vpop.f32.mrb[14].mxu0  ;;  %3480 = vmatprep.mubr.bf16.mxu1 %v1056_v2 }
 0x22b   : > { %v1033_v8 = vadd.f32 %v3455_v7, %v3133_v24  ;;  %v1024_v9 = vpop.f32.mrb[15].mxu0  ;;  %3481 = vmatmul.mubr.bf16.gmra.mrb[8].mxu1 %v1057_v1  ;;  %v1050_v11 = vmax.f32 %v1030_v4, 0.0 }
 0x22c   : > { %v1025_v10 = vadd.f32 %v3133_v24, %v1024_v9  ;;  %v1048_v13 = vmax.f32 %v1022_v6, 0.0 }
 0x22d   : > { %v1051_v12 = vmax.f32 %v1033_v8, 0.0 }
 0x22e   : > { %v1049_v14 = vmax.f32 %v1025_v10, 0.0 }
 0x22f   : > { %v1059_v15 = vpack.c.bf16 %v1051_v12, %v1050_v11 }
 0x230   : > { %v1058_v16 = vpack.c.bf16 %v1049_v14, %v1048_v13 }
 0x232   : > { %3484 = vmatprep.mubr.bf16.mxu1 %v1058_v16 }
 0x233   : > { %3485 = vmatmul.mubr.bf16.gmra.mrb[12].mxu1 %v1059_v15 }
 0x2ee   : > { %v3474_v17 = vpop.f32.mrb[0].mxu1 }
 0x2ef   : > { %v1165_v19 = vpop.f32.mrb[1].mxu1  ;;  %v1174_v21 = vadd.f32 %v3474_v17, %v3150_v18 }
 0x2f0   : > { %v3475_v20 = vpop.f32.mrb[2].mxu1  ;;  %v1166_v25 = vadd.f32 %v3150_v18, %v1165_v19 }
 0x2f1   : > { %v1177_v22 = vadd.f32 %v3475_v20, %v3150_v18  ;;  %v1168_v23 = vpop.f32.mrb[3].mxu1 }
 0x2f2   : > { %v1169_v24 = vadd.f32 %v3150_v18, %v1168_v23 }
 0x2f3   : > { %v1229_v26 = vpack.c.bf16 %v1177_v22, %v1174_v21 }
 0x2f4   : > { %v1228_v27 = vpack.c.bf16 %v1169_v24, %v1166_v25 }
 0x2f5   : > { %1241 = vst [vmem:[#allocation2 + $0x8] sm:$0xff] %v1229_v26 }
 0x2f6   : > { %1240 = vst [vmem:[#allocation2] sm:$0xff] %v1228_v27  ;;  %v3478_v28 = vpop.f32.mrb[4].mxu1 }
 0x2f7   : > { %v1181_v29 = vpop.f32.mrb[5].mxu1  ;;  %v1190_v31 = vadd.f32 %v3478_v28, %v3150_v18 }
 0x2f8   : > { %v3479_v30 = vpop.f32.mrb[6].mxu1  ;;  %v1182_v34 = vadd.f32 %v3150_v18, %v1181_v29 }
 0x2f9   : > { %v1193_v32 = vadd.f32 %v3479_v30, %v3150_v18  ;;  %v1184_v33 = vpop.f32.mrb[7].mxu1 }
 0x2fa   : > { %v1185_v35 = vadd.f32 %v3150_v18, %v1184_v33 }
 0x2fb   : > { %v1231_v36 = vpack.c.bf16 %v1193_v32, %v1190_v31 }
 0x2fc   : > { %v1230_v37 = vpack.c.bf16 %v1185_v35, %v1182_v34 }
 0x2fd   : > { %1243 = vst [vmem:[#allocation2 + $0x18] sm:$0xff] %v1231_v36 }
 0x2fe   : > { %1242 = vst [vmem:[#allocation2 + $0x10] sm:$0xff] %v1230_v37  ;;  %v3482_v38 = vpop.f32.mrb[8].mxu1 }
 0x2ff   : > { %v1197_v39 = vpop.f32.mrb[9].mxu1  ;;  %v1206_v41 = vadd.f32 %v3482_v38, %v3150_v18 }
 0x300   : > { %v3483_v40 = vpop.f32.mrb[10].mxu1  ;;  %v1198_v44 = vadd.f32 %v3150_v18, %v1197_v39 }
 0x301   : > { %v1209_v42 = vadd.f32 %v3483_v40, %v3150_v18  ;;  %v1200_v43 = vpop.f32.mrb[11].mxu1 }
 0x302   : > { %v1201_v45 = vadd.f32 %v3150_v18, %v1200_v43 }
 0x303   : > { %v1233_v46 = vpack.c.bf16 %v1209_v42, %v1206_v41 }
 0x304   : > { %v1232_v47 = vpack.c.bf16 %v1201_v45, %v1198_v44 }
 0x305   : > { %1245 = vst [vmem:[#allocation2 + $0x28] sm:$0xff] %v1233_v46 }
 0x306   : > { %1244 = vst [vmem:[#allocation2 + $0x20] sm:$0xff] %v1232_v47  ;;  %v3486_v48 = vpop.f32.mrb[12].mxu1 }
 0x307   : > { %v1213_v49 = vpop.f32.mrb[13].mxu1  ;;  %v1222_v51 = vadd.f32 %v3486_v48, %v3150_v18 }
 0x308   : > { %v3487_v50 = vpop.f32.mrb[14].mxu1  ;;  %v1214_v54 = vadd.f32 %v3150_v18, %v1213_v49 }
 0x309   : > { %v1225_v52 = vadd.f32 %v3487_v50, %v3150_v18  ;;  %v1216_v53 = vpop.f32.mrb[15].mxu1 }
 0x30a   : > { %v1217_v55 = vadd.f32 %v3150_v18, %v1216_v53 }
 0x30b   : > { %v1235_v56 = vpack.c.bf16 %v1225_v52, %v1222_v51 }
 0x30c   : > { %v1234_v57 = vpack.c.bf16 %v1217_v55, %v1214_v54 }
 0x30d   : > { %1247 = vst [vmem:[#allocation2 + $0x38] sm:$0xff] %v1235_v56 }
 0x30e   : > { %1246 = vst [vmem:[#allocation2 + $0x30] sm:$0xff] %v1234_v57 }
 0x30f PF: > { %s4981_s25 = sld [smem:[#allocation24_spill]]  ;;  %p1253_p6 = scmp.lt.s32.totalorder %s4758_s11, 0 }
 0x310   : > { %s1254_s2 = ssub.s32 0, %s4758_s11 }
 0x311   : > { %s3160_s4 = smin.u32 %s4758_s11, %s1254_s2 }
 0x312   : > { %s1256_s21 = sand.u32 1, %s3160_s4  }
 0x313   : > { %s1257_s13 = ssub.s32 0, %s1256_s21 }
 0x314   : > { %s5009_s13 = smov (!%p1253_p6, %s1257_s13), %s1256_s21 }
 0x315   : > { %p1248_p12 = scmp.ge.s32.totalorder %s4981_s25, 1  ;;  %p1249_p4 = scmp.le.s32.totalorder %s4981_s25, 3 }
 0x316   : > { %p3162_p9 = scmp.lt.s32.totalorder %s5009_s13, 0  ;;  %s1263_s28 = sadd.s32 2, %s5009_s13 }
 0x317   : > { %p4785_p10 = pnand %p1249_p4, %p1248_p12 }
 0x318   : > { %s5011_s28 = smov (!%p3162_p9, %s1263_s28), %s5009_s13 }
 0x319   : > { %p1251_p5 = pneg %p4785_p10  ;;  %p1265_p11 = scmp.eq.s32.totalorder %s5011_s28, 0 }
 0x31b   : > { %p1266_p0 = pnand %p1265_p11, %p1251_p5 }
 0x31c   : > { %v1290_v58 = vld [vmem:[#allocation2] sm:$0xff] (!%p1266_p0)  ;;  %v1291_v59 = vld [vmem:[#allocation2 + $0x8] sm:$0xff] (!%p1266_p0)  ;;  %v1292_v61 = vld [vmem:[#allocation2 + $0x10] sm:$0xff] (!%p1266_p0) }
 0x31d   : > { %1269 = sbr.rel (%p1266_p0) target bundleno = 1515 (0x5eb), region = 116  ;;  %3488 = vmatprep.subr.bf16.mxu0 (!%p1266_p0), %v1290_v58  ;;  %v3937_v60 = vld [vmem:[#allocation7] sm:$0xff] (!%p1266_p0)   ;;  %v1293_v62 = vld [vmem:[#allocation2 + $0x18] sm:$0xff] (!%p1266_p0)  ;;  %v3946_v1 = vld [vmem:[%s4741_s29 + $0x8] sm:$0xff] (!%p1266_p0)  }
 0x31e   : > { %3489 = vmatpush3.bf16.msra.mxu0 (!%p1266_p0), %v1290_v58  ;;  %3504 = vmatprep.mubr.bf16.mxu0 (!%p1266_p0), %v3937_v60  ;;  %v1294_v63 = vld [vmem:[#allocation2 + $0x20] sm:$0xff] (!%p1266_p0)  ;;  %v3947_v2 = vld [vmem:[%s4741_s29 + $0x10] sm:$0xff] (!%p1266_p0)   ;;  %v1295_v3 = vld [vmem:[#allocation2 + $0x28] sm:$0xff] (!%p1266_p0) }
 0x31f   : > { %3490 = vmatprep.subr.bf16.mxu0 (!%p1266_p0), %v1291_v59  ;;  %v3945_v0 = vld [vmem:[%s4741_s29] sm:$0xff] (!%p1266_p0)   ;;  %v3948_v4 = vld [vmem:[%s4741_s29 + $0x18] sm:$0xff] (!%p1266_p0)   ;;  %v1296_v5 = vld [vmem:[#allocation2 + $0x30] sm:$0xff] (!%p1266_p0) }
 0x320   : > { %3520 = vmatprep.subr.bf16.mxu1 (!%p1266_p0), %v3945_v0  ;;  %v3949_v6 = vld [vmem:[%s4741_s29 + $0x20] sm:$0xff] (!%p1266_p0)   ;;  %v1297_v7 = vld [vmem:[#allocation2 + $0x38] sm:$0xff] (!%p1266_p0)  ;;  %v3950_v8 = vld [vmem:[%s4741_s29 + $0x28] sm:$0xff] (!%p1266_p0)  }
 0x321   : > { %3521 = vmatpush3.bf16.msra.mxu1 (!%p1266_p0), %v3945_v0  ;;  %v3938_v9 = vld [vmem:[#allocation7 + $0x8] sm:$0xff] (!%p1266_p0)   ;;  %v3939_v10 = vld [vmem:[#allocation7 + $0x10] sm:$0xff] (!%p1266_p0)   ;;  %v3940_v12 = vld [vmem:[#allocation7 + $0x18] sm:$0xff] (!%p1266_p0)  }
 0x322   : > { %3491 = vmatpush3.bf16.msra.mxu0 (!%p1266_p0), %v1291_v59  ;;  %3522 = vmatprep.subr.bf16.mxu1 (!%p1266_p0), %v3946_v1  ;;  %v3951_v11 = vld [vmem:[%s4741_s29 + $0x30] sm:$0xff] (!%p1266_p0)   ;;  %v3941_v13 = vld [vmem:[#allocation7 + $0x20] sm:$0xff] (!%p1266_p0)   ;;  %v3942_v14 = vld [vmem:[#allocation7 + $0x28] sm:$0xff] (!%p1266_p0)  }
 0x323   : > { %3492 = vmatprep.subr.bf16.mxu0 (!%p1266_p0), %v1292_v61  ;;  %v3943_v15 = vld [vmem:[#allocation7 + $0x30] sm:$0xff] (!%p1266_p0)   ;;  %v3944_v16 = vld [vmem:[#allocation7 + $0x38] sm:$0xff] (!%p1266_p0)   ;;  %v3953_v18 = vld [vmem:[%s4747_s1] sm:$0xff] (!%p1266_p0)  }
 0x324   : > { %v3952_v17 = vld [vmem:[%s4741_s29 + $0x38] sm:$0xff]   ;;  %v3954_v19 = vld [vmem:[%s4747_s1 + $0x8] sm:$0xff]   ;;  %v3955_v20 = vld [vmem:[%s4747_s1 + $0x10] sm:$0xff]  }
 0x325   : > { %3523 = vmatpush3.bf16.msra.mxu1 %v3946_v1  ;;  %v3956_v21 = vld [vmem:[%s4747_s1 + $0x18] sm:$0xff]   ;;  %v3957_v22 = vld [vmem:[%s4747_s1 + $0x20] sm:$0xff]   ;;  %v3958_v23 = vld [vmem:[%s4747_s1 + $0x28] sm:$0xff]  }
 0x326   : > { %3493 = vmatpush3.bf16.msra.mxu0 %v1292_v61  ;;  %3524 = vmatprep.subr.bf16.mxu1 %v3947_v2  ;;  %v3959_v48 = vld [vmem:[%s4747_s1 + $0x30] sm:$0xff]   ;;  %v3960_v49 = vld [vmem:[%s4747_s1 + $0x38] sm:$0xff]   ;;  %v3171_v50 = vld [vmem:[%s4766_s22] ss:$0 sm:$0xff] }
 0x327   : > { %3494 = vmatprep.subr.bf16.mxu0 %v1293_v62 }
 0x329   : > { %3525 = vmatpush3.bf16.msra.mxu1 %v3947_v2 }
 0x32a   : > { %3495 = vmatpush3.bf16.msra.mxu0 %v1293_v62  ;;  %3526 = vmatprep.subr.bf16.mxu1 %v3948_v4 }
 0x32b   : > { %3496 = vmatprep.subr.bf16.mxu0 %v1294_v63 }
 0x32d   : > { %3527 = vmatpush3.bf16.msra.mxu1 %v3948_v4 }
 0x32e   : > { %3497 = vmatpush3.bf16.msra.mxu0 %v1294_v63  ;;  %3528 = vmatprep.subr.bf16.mxu1 %v3949_v6 }
 0x32f   : > { %3498 = vmatprep.subr.bf16.mxu0 %v1295_v3 }
 0x331   : > { %3529 = vmatpush3.bf16.msra.mxu1 %v3949_v6 }
 0x332   : > { %3499 = vmatpush3.bf16.msra.mxu0 %v1295_v3  ;;  %3530 = vmatprep.subr.bf16.mxu1 %v3950_v8 }
 0x333   : > { %3500 = vmatprep.subr.bf16.mxu0 %v1296_v5 }
 0x335   : > { %3531 = vmatpush3.bf16.msra.mxu1 %v3950_v8 }
 0x336   : > { %3501 = vmatpush3.bf16.msra.mxu0 %v1296_v5  ;;  %3532 = vmatprep.subr.bf16.mxu1 %v3951_v11 }
 0x337   : > { %3502 = vmatprep.subr.bf16.mxu0 %v1297_v7 }
 0x339   : > { %3533 = vmatpush3.bf16.msra.mxu1 %v3951_v11 }
 0x33a   : > { %3503 = vmatpush3.bf16.msra.mxu0 %v1297_v7  ;;  %3534 = vmatprep.subr.bf16.mxu1 %v3952_v17 }
 0x33b   : > { %3552 = vmatprep.subr.bf16.mxu0 %v3953_v18 }
 0x33d   : > { %3505 = vmatmul.mubr.bf16.vlgmr.msra.gmra.mrb[0].mxu0 %v3938_v9  ;;  %3535 = vmatpush3.bf16.msra.mxu1 %v3952_v17 }
 0x33e   : > { %3508 = vmatprep.mubr.bf16.mxu0 %v3939_v10  ;;  %3744 = vmatprep.subr.bf16.mxu1 %v3953_v18 }
 0x33f   : > { %3553 = vmatpush3.bf16.msra.mxu0 %v3953_v18 }
 0x340   : > { %3554 = vmatprep.subr.bf16.mxu0 %v3954_v19 }
 0x343   : > { %3555 = vmatpush3.bf16.msra.mxu0 %v3954_v19 }
 0x344   : > { %3556 = vmatprep.subr.bf16.mxu0 %v3955_v20 }
 0x345   : > { %3509 = vmatmul.mubr.bf16.gmra.mrb[4].mxu0 %v3940_v12 }
 0x346   : > { %3512 = vmatprep.mubr.bf16.mxu0 %v3941_v13 }
 0x347   : > { %3557 = vmatpush3.bf16.msra.mxu0 %v3955_v20 }
 0x348   : > { %3558 = vmatprep.subr.bf16.mxu0 %v3956_v21 }
 0x34b   : > { %3559 = vmatpush3.bf16.msra.mxu0 %v3956_v21 }
 0x34c   : > { %3560 = vmatprep.subr.bf16.mxu0 %v3957_v22 }
 0x34d   : > { %3513 = vmatmul.mubr.bf16.gmra.mrb[8].mxu0 %v3942_v14 }
 0x34e   : > { %3516 = vmatprep.mubr.bf16.mxu0 %v3943_v15 }
 0x34f   : > { %3561 = vmatpush3.bf16.msra.mxu0 %v3957_v22 }
 0x350   : > { %3562 = vmatprep.subr.bf16.mxu0 %v3958_v23 }
 0x353   : > { %3563 = vmatpush3.bf16.msra.mxu0 %v3958_v23 }
 0x354   : > { %3564 = vmatprep.subr.bf16.mxu0 %v3959_v48 }
 0x355   : > { %3517 = vmatmul.mubr.bf16.gmra.mrb[12].mxu0 %v3944_v16 }
 0x357   : > { %3565 = vmatpush3.bf16.msra.mxu0 %v3959_v48 }
 0x358   : > { %3566 = vmatprep.subr.bf16.mxu0 %v3960_v49 }
 0x35b   : > { %3567 = vmatpush3.bf16.msra.mxu0 %v3960_v49 }
 0x410   : > { %v3506_v25 = vpop.f32.mrb[0].mxu0 }
 0x411   : > { %v1380_v24 = vpop.f32.mrb[1].mxu0 }
 0x412   : > { %v3507_v26 = vpop.f32.mrb[2].mxu0 }
 0x413   : > { %v1444_v27 = vpack.c.bf16 %v3507_v26, %v3506_v25  ;;  %v1383_v28 = vpop.f32.mrb[3].mxu0 }
 0x414   : > { %v1443_v29 = vpack.c.bf16 %v1383_v28, %v1380_v24 }
 0x416   : > { %3536 = vmatprep.mubr.bf16.mxu1 %v1443_v29 }
 0x417   : > { %3537 = vmatmul.mubr.bf16.vlgmr.msra.gmra.mrb[0].mxu1 %v1444_v27 }
 0x418   : > { %v3510_v30 = vpop.f32.mrb[4].mxu0  ;;  %3752 = vmatpush3.bf16.msra.mxu1 %v3953_v18 }
 0x419   : > { %v1396_v31 = vpop.f32.mrb[5].mxu0  ;;  %3745 = vmatprep.subr.bf16.mxu1 %v3954_v19 }
 0x41a   : > { %v3511_v32 = vpop.f32.mrb[6].mxu0 }
 0x41b   : > { %v1446_v33 = vpack.c.bf16 %v3511_v32, %v3510_v30  ;;  %v1399_v34 = vpop.f32.mrb[7].mxu0 }
 0x41c   : > { %v1445_v35 = vpack.c.bf16 %v1399_v34, %v1396_v31  ;;  %3753 = vmatpush3.bf16.msra.mxu1 %v3954_v19 }
 0x41d   : > { %3746 = vmatprep.subr.bf16.mxu1 %v3955_v20 }
 0x41e   : > { %3540 = vmatprep.mubr.bf16.mxu1 %v1445_v35 }
 0x41f   : > { %3541 = vmatmul.mubr.bf16.gmra.mrb[4].mxu1 %v1446_v33 }
 0x420   : > { %v3514_v36 = vpop.f32.mrb[8].mxu0  ;;  %3754 = vmatpush3.bf16.msra.mxu1 %v3955_v20 }
 0x421   : > { %v1412_v37 = vpop.f32.mrb[9].mxu0  ;;  %3747 = vmatprep.subr.bf16.mxu1 %v3956_v21 }
 0x422   : > { %v3515_v38 = vpop.f32.mrb[10].mxu0 }
 0x423   : > { %v1448_v39 = vpack.c.bf16 %v3515_v38, %v3514_v36  ;;  %v1415_v40 = vpop.f32.mrb[11].mxu0 }
 0x424   : > { %v1447_v41 = vpack.c.bf16 %v1415_v40, %v1412_v37  ;;  %3755 = vmatpush3.bf16.msra.mxu1 %v3956_v21 }
 0x425   : > { %3748 = vmatprep.subr.bf16.mxu1 %v3957_v22 }
 0x426   : > { %3544 = vmatprep.mubr.bf16.mxu1 %v1447_v41 }
 0x427   : > { %3545 = vmatmul.mubr.bf16.gmra.mrb[8].mxu1 %v1448_v39 }
 0x428   : > { %v3518_v42 = vpop.f32.mrb[12].mxu0  ;;  %3756 = vmatpush3.bf16.msra.mxu1 %v3957_v22 }
 0x429   : > { %v1428_v43 = vpop.f32.mrb[13].mxu0  ;;  %3749 = vmatprep.subr.bf16.mxu1 %v3958_v23 }
 0x42a   : > { %v3519_v44 = vpop.f32.mrb[14].mxu0 }
 0x42b   : > { %v1450_v45 = vpack.c.bf16 %v3519_v44, %v3518_v42  ;;  %v1431_v46 = vpop.f32.mrb[15].mxu0 }
 0x42c   : > { %v1449_v47 = vpack.c.bf16 %v1431_v46, %v1428_v43  ;;  %3757 = vmatpush3.bf16.msra.mxu1 %v3958_v23  ;;  %v3180_v43 = vld [vmem:[%s4771_s5] ss:$0 sm:$0xff] }
 0x42d   : > { %3750 = vmatprep.subr.bf16.mxu1 %v3959_v48 }
 0x42e   : > { %3548 = vmatprep.mubr.bf16.mxu1 %v1449_v47 }
 0x42f   : > { %3549 = vmatmul.mubr.bf16.gmra.mrb[12].mxu1 %v1450_v45 }
 0x430   : > { %3758 = vmatpush3.bf16.msra.mxu1 %v3959_v48 }
 0x431   : > { %3751 = vmatprep.subr.bf16.mxu1 %v3960_v49 }
 0x434   : > { %3759 = vmatpush3.bf16.msra.mxu1 %v3960_v49 }
 0x4ea   : > { %v3538_v51 = vpop.f32.mrb[0].mxu1 }
 0x4eb   : > { %v1565_v52 = vadd.f32 %v3538_v51, %v3171_v50  ;;  %v1556_v53 = vpop.f32.mrb[1].mxu1 }
 0x4ec   : > { %v1557_v54 = vadd.f32 %v3171_v50, %v1556_v53  ;;  %v3539_v55 = vpop.f32.mrb[2].mxu1 }
 0x4ed   : > { %v1568_v56 = vadd.f32 %v3539_v55, %v3171_v50  ;;  %v1559_v57 = vpop.f32.mrb[3].mxu1  ;;  %v1621_v59 = vmax.f32 %v1565_v52, 0.0 }
 0x4ee   : > { %v1560_v58 = vadd.f32 %v3171_v50, %v1559_v57  ;;  %v1619_v61 = vmax.f32 %v1557_v54, 0.0 }
 0x4ef   : > { %v1622_v60 = vmax.f32 %v1568_v56, 0.0 }
 0x4f0   : > { %v1620_v62 = vmax.f32 %v1560_v58, 0.0 }
 0x4f1   : > { %v1636_v63 = vpack.c.bf16 %v1622_v60, %v1621_v59 }
 0x4f2   : > { %v1635_v0 = vpack.c.bf16 %v1620_v62, %v1619_v61  ;;  %v3542_v1 = vpop.f32.mrb[4].mxu1 }
 0x4f3   : > { %v1581_v2 = vadd.f32 %v3542_v1, %v3171_v50  ;;  %v1572_v3 = vpop.f32.mrb[5].mxu1 }
 0x4f4   : > { %v1573_v4 = vadd.f32 %v3171_v50, %v1572_v3  ;;  %v3543_v5 = vpop.f32.mrb[6].mxu1  ;;  %3568 = vmatprep.mubr.bf16.mxu0 %v1635_v0 }
 0x4f5   : > { %v1584_v6 = vadd.f32 %v3543_v5, %v3171_v50  ;;  %v1575_v7 = vpop.f32.mrb[7].mxu1  ;;  %3569 = vmatmul.mubr.bf16.vlgmr.msra.gmra.mrb[16].mxu0 %v1636_v63  ;;  %v1625_v9 = vmax.f32 %v1581_v2, 0.0 }
 0x4f6   : > { %v1576_v8 = vadd.f32 %v3171_v50, %v1575_v7  ;;  %v1623_v11 = vmax.f32 %v1573_v4, 0.0 }
 0x4f7   : > { %v1626_v10 = vmax.f32 %v1584_v6, 0.0 }
 0x4f8   : > { %v1624_v12 = vmax.f32 %v1576_v8, 0.0 }
 0x4f9   : > { %v1638_v13 = vpack.c.bf16 %v1626_v10, %v1625_v9 }
 0x4fa   : > { %v1637_v14 = vpack.c.bf16 %v1624_v12, %v1623_v11  ;;  %v3546_v15 = vpop.f32.mrb[8].mxu1 }
 0x4fb   : > { %v1597_v16 = vadd.f32 %v3546_v15, %v3171_v50  ;;  %v1588_v17 = vpop.f32.mrb[9].mxu1 }
 0x4fc   : > { %v1589_v18 = vadd.f32 %v3171_v50, %v1588_v17  ;;  %v3547_v19 = vpop.f32.mrb[10].mxu1  ;;  %3572 = vmatprep.mubr.bf16.mxu0 %v1637_v14 }
 0x4fd   : > { %v1600_v20 = vadd.f32 %v3547_v19, %v3171_v50  ;;  %v1591_v21 = vpop.f32.mrb[11].mxu1  ;;  %3573 = vmatmul.mubr.bf16.gmra.mrb[20].mxu0 %v1638_v13  ;;  %v1629_v23 = vmax.f32 %v1597_v16, 0.0 }
 0x4fe   : > { %v1592_v22 = vadd.f32 %v3171_v50, %v1591_v21  ;;  %v1627_v24 = vmax.f32 %v1589_v18, 0.0 }
 0x4ff   : > { %v1630_v25 = vmax.f32 %v1600_v20, 0.0 }
 0x500   : > { %v1628_v26 = vmax.f32 %v1592_v22, 0.0 }
 0x501   : > { %v1640_v27 = vpack.c.bf16 %v1630_v25, %v1629_v23 }
 0x502   : > { %v1639_v28 = vpack.c.bf16 %v1628_v26, %v1627_v24  ;;  %v3550_v29 = vpop.f32.mrb[12].mxu1 }
 0x503   : > { %v1613_v30 = vadd.f32 %v3550_v29, %v3171_v50  ;;  %v1604_v31 = vpop.f32.mrb[13].mxu1 }
 0x504   : > { %v1605_v32 = vadd.f32 %v3171_v50, %v1604_v31  ;;  %v3551_v33 = vpop.f32.mrb[14].mxu1  ;;  %3576 = vmatprep.mubr.bf16.mxu1 %v1639_v28 }
 0x505   : > { %v1616_v34 = vadd.f32 %v3551_v33, %v3171_v50  ;;  %v1607_v35 = vpop.f32.mrb[15].mxu1  ;;  %3577 = vmatmul.mubr.bf16.vlgmr.msra.gmra.mrb[16].mxu1 %v1640_v27  ;;  %v1633_v37 = vmax.f32 %v1613_v30, 0.0 }
 0x506   : > { %v1608_v36 = vadd.f32 %v3171_v50, %v1607_v35  ;;  %v1631_v39 = vmax.f32 %v1605_v32, 0.0 }
 0x507   : > { %v1634_v38 = vmax.f32 %v1616_v34, 0.0 }
 0x508   : > { %v1632_v40 = vmax.f32 %v1608_v36, 0.0 }
 0x509   : > { %v1642_v41 = vpack.c.bf16 %v1634_v38, %v1633_v37 }
 0x50a   : > { %v1641_v42 = vpack.c.bf16 %v1632_v40, %v1631_v39 }
 0x50c   : > { %3580 = vmatprep.mubr.bf16.mxu1 %v1641_v42 }
 0x50d   : > { %3581 = vmatmul.mubr.bf16.gmra.mrb[20].mxu1 %v1642_v41 }
 0x5c8   : > { %v3570_v44 = vpop.f32.mrb[16].mxu0 }
 0x5c9   : > { %v1757_v45 = vadd.f32 %v3570_v44, %v3180_v43  ;;  %v1748_v46 = vpop.f32.mrb[17].mxu0 }
 0x5ca   : > { %v1749_v47 = vadd.f32 %v3180_v43, %v1748_v46  ;;  %v3571_v48 = vpop.f32.mrb[18].mxu0 }
 0x5cb   : > { %v1760_v49 = vadd.f32 %v3571_v48, %v3180_v43  ;;  %v1751_v51 = vpop.f32.mrb[19].mxu0  ;;  %v1813_v53 = vmax.f32 %v1757_v45, 0.0 }
 0x5cc   : > { %v1752_v52 = vadd.f32 %v3180_v43, %v1751_v51  ;;  %v1811_v50 = vmax.f32 %v1749_v47, 0.0 }
 0x5cd   : > { %v1814_v54 = vmax.f32 %v1760_v49, 0.0 }
 0x5ce   : > { %v1812_v55 = vmax.f32 %v1752_v52, 0.0 }
 0x5cf   : > { %v1828_v56 = vpack.c.bf16 %v1814_v54, %v1813_v53 }
 0x5d0   : > { %v1827_v57 = vpack.c.bf16 %v1812_v55, %v1811_v50  ;;  %v3574_v58 = vpop.f32.mrb[20].mxu0 }
 0x5d1   : > { %1840 = vst [vmem:[#allocation3 + $0x8] sm:$0xff] %v1828_v56  ;;  %v1773_v59 = vadd.f32 %v3574_v58, %v3180_v43  ;;  %v1764_v60 = vpop.f32.mrb[21].mxu0 }
 0x5d2   : > { %1839 = vst [vmem:[#allocation3] sm:$0xff] %v1827_v57  ;;  %v1765_v61 = vadd.f32 %v3180_v43, %v1764_v60  ;;  %v3575_v62 = vpop.f32.mrb[22].mxu0 }
 0x5d3   : > { %v1776_v63 = vadd.f32 %v3575_v62, %v3180_v43  ;;  %v1767_v0 = vpop.f32.mrb[23].mxu0  ;;  %v1817_v2 = vmax.f32 %v1773_v59, 0.0 }
 0x5d4   : > { %v1768_v1 = vadd.f32 %v3180_v43, %v1767_v0  ;;  %v1815_v4 = vmax.f32 %v1765_v61, 0.0 }
 0x5d5   : > { %v1818_v3 = vmax.f32 %v1776_v63, 0.0 }
 0x5d6   : > { %v1816_v5 = vmax.f32 %v1768_v1, 0.0 }
 0x5d7   : > { %v1830_v6 = vpack.c.bf16 %v1818_v3, %v1817_v2 }
 0x5d8   : > { %v1829_v7 = vpack.c.bf16 %v1816_v5, %v1815_v4  ;;  %v3578_v8 = vpop.f32.mrb[16].mxu1 }
 0x5d9   : > { %1842 = vst [vmem:[#allocation3 + $0x18] sm:$0xff] %v1830_v6  ;;  %v1789_v9 = vadd.f32 %v3578_v8, %v3180_v43  ;;  %v1780_v10 = vpop.f32.mrb[17].mxu1 }
 0x5da   : > { %1841 = vst [vmem:[#allocation3 + $0x10] sm:$0xff] %v1829_v7  ;;  %v1781_v11 = vadd.f32 %v3180_v43, %v1780_v10  ;;  %v3579_v12 = vpop.f32.mrb[18].mxu1 }
 0x5db   : > { %v1792_v13 = vadd.f32 %v3579_v12, %v3180_v43  ;;  %v1783_v14 = vpop.f32.mrb[19].mxu1  ;;  %v1821_v16 = vmax.f32 %v1789_v9, 0.0 }
 0x5dc   : > { %v1784_v15 = vadd.f32 %v3180_v43, %v1783_v14  ;;  %v1819_v18 = vmax.f32 %v1781_v11, 0.0 }
 0x5dd   : > { %v1822_v17 = vmax.f32 %v1792_v13, 0.0 }
 0x5de   : > { %v1820_v19 = vmax.f32 %v1784_v15, 0.0 }
 0x5df   : > { %v1832_v20 = vpack.c.bf16 %v1822_v17, %v1821_v16 }
 0x5e0   : > { %v1831_v21 = vpack.c.bf16 %v1820_v19, %v1819_v18  ;;  %v3582_v22 = vpop.f32.mrb[20].mxu1 }
 0x5e1   : > { %1844 = vst [vmem:[#allocation3 + $0x28] sm:$0xff] %v1832_v20  ;;  %v1805_v23 = vadd.f32 %v3582_v22, %v3180_v43  ;;  %v1796_v25 = vpop.f32.mrb[21].mxu1 }
 0x5e2   : > { %1843 = vst [vmem:[#allocation3 + $0x20] sm:$0xff] %v1831_v21  ;;  %v1797_v24 = vadd.f32 %v3180_v43, %v1796_v25  ;;  %v3583_v26 = vpop.f32.mrb[22].mxu1 }
 0x5e3   : > { %v1808_v27 = vadd.f32 %v3583_v26, %v3180_v43  ;;  %v1799_v28 = vpop.f32.mrb[23].mxu1  ;;  %v1825_v30 = vmax.f32 %v1805_v23, 0.0 }
 0x5e4   : > { %v1800_v29 = vadd.f32 %v3180_v43, %v1799_v28  ;;  %v1823_v32 = vmax.f32 %v1797_v24, 0.0 }
 0x5e5   : > { %v1826_v31 = vmax.f32 %v1808_v27, 0.0 }
 0x5e6   : > { %v1824_v33 = vmax.f32 %v1800_v29, 0.0 }
 0x5e7   : > { %v1834_v34 = vpack.c.bf16 %v1826_v31, %v1825_v30 }
 0x5e8   : > { %v1833_v35 = vpack.c.bf16 %v1824_v33, %v1823_v32 }
 0x5e9   : > { %1846 = vst [vmem:[#allocation3 + $0x38] sm:$0xff] %v1834_v34 }
 0x5ea   : > { %1845 = vst [vmem:[#allocation3 + $0x30] sm:$0xff] %v1833_v35 }
 0x5eb PF: > { %p1847_p3 = scmp.eq.s32.totalorder %s5011_s28, 1 }
 0x5ed   : > { %p1848_p8 = pnand %p1847_p3, %p1251_p5 }
 0x5ee   : > { %v1872_v36 = vld [vmem:[#allocation3] sm:$0xff] (!%p1848_p8)  ;;  %v1873_v37 = vld [vmem:[#allocation3 + $0x8] sm:$0xff] (!%p1848_p8)  ;;  %v1874_v39 = vld [vmem:[#allocation3 + $0x10] sm:$0xff] (!%p1848_p8) }
 0x5ef   : > { %1851 = sbr.rel (%p1848_p8) target bundleno = 2237 (0x8bd), region = 120  ;;  %3584 = vmatprep.subr.bf16.mxu0 (!%p1848_p8), %v1872_v36  ;;  %v3961_v38 = vld [vmem:[#allocation7] sm:$0xff] (!%p1848_p8)   ;;  %v1875_v40 = vld [vmem:[#allocation3 + $0x18] sm:$0xff] (!%p1848_p8)  ;;  %v3970_v43 = vld [vmem:[%s4741_s29 + $0x8] sm:$0xff] (!%p1848_p8)  }
 0x5f0   : > { %3585 = vmatpush3.bf16.msra.mxu0 (!%p1848_p8), %v1872_v36  ;;  %3600 = vmatprep.mubr.bf16.mxu0 (!%p1848_p8), %v3961_v38  ;;  %v1876_v41 = vld [vmem:[#allocation3 + $0x20] sm:$0xff] (!%p1848_p8)  ;;  %v3971_v44 = vld [vmem:[%s4741_s29 + $0x10] sm:$0xff] (!%p1848_p8)   ;;  %v1877_v45 = vld [vmem:[#allocation3 + $0x28] sm:$0xff] (!%p1848_p8) }
 0x5f1   : > { %3586 = vmatprep.subr.bf16.mxu0 (!%p1848_p8), %v1873_v37  ;;  %v3969_v42 = vld [vmem:[%s4741_s29] sm:$0xff] (!%p1848_p8)   ;;  %v3972_v46 = vld [vmem:[%s4741_s29 + $0x18] sm:$0xff] (!%p1848_p8)   ;;  %v1878_v47 = vld [vmem:[#allocation3 + $0x30] sm:$0xff] (!%p1848_p8) }
 0x5f2   : > { %3616 = vmatprep.subr.bf16.mxu1 (!%p1848_p8), %v3969_v42  ;;  %v3973_v48 = vld [vmem:[%s4741_s29 + $0x20] sm:$0xff] (!%p1848_p8)   ;;  %v1879_v49 = vld [vmem:[#allocation3 + $0x38] sm:$0xff] (!%p1848_p8)  ;;  %v3974_v51 = vld [vmem:[%s4741_s29 + $0x28] sm:$0xff] (!%p1848_p8)  }
 0x5f3   : > { %3617 = vmatpush3.bf16.msra.mxu1 (!%p1848_p8), %v3969_v42  ;;  %v3962_v52 = vld [vmem:[#allocation7 + $0x8] sm:$0xff] (!%p1848_p8)   ;;  %v3963_v53 = vld [vmem:[#allocation7 + $0x10] sm:$0xff] (!%p1848_p8)   ;;  %v3964_v50 = vld [vmem:[#allocation7 + $0x18] sm:$0xff] (!%p1848_p8)  }
 0x5f4   : > { %3587 = vmatpush3.bf16.msra.mxu0 (!%p1848_p8), %v1873_v37  ;;  %3618 = vmatprep.subr.bf16.mxu1 (!%p1848_p8), %v3970_v43  ;;  %v3975_v54 = vld [vmem:[%s4741_s29 + $0x30] sm:$0xff] (!%p1848_p8)   ;;  %v3965_v55 = vld [vmem:[#allocation7 + $0x20] sm:$0xff] (!%p1848_p8)   ;;  %v3966_v56 = vld [vmem:[#allocation7 + $0x28] sm:$0xff] (!%p1848_p8)  }
 0x5f5   : > { %3588 = vmatprep.subr.bf16.mxu0 (!%p1848_p8), %v1874_v39  ;;  %v3967_v57 = vld [vmem:[#allocation7 + $0x30] sm:$0xff] (!%p1848_p8)   ;;  %v3968_v58 = vld [vmem:[#allocation7 + $0x38] sm:$0xff] (!%p1848_p8)   ;;  %v3977_v60 = vld [vmem:[%s4747_s1] sm:$0xff] (!%p1848_p8)  }
 0x5f6   : > { %v3976_v59 = vld [vmem:[%s4741_s29 + $0x38] sm:$0xff]   ;;  %v3978_v61 = vld [vmem:[%s4747_s1 + $0x8] sm:$0xff]   ;;  %v3979_v62 = vld [vmem:[%s4747_s1 + $0x10] sm:$0xff]  }
 0x5f7   : > { %3619 = vmatpush3.bf16.msra.mxu1 %v3970_v43  ;;  %v3980_v63 = vld [vmem:[%s4747_s1 + $0x18] sm:$0xff]   ;;  %v3981_v0 = vld [vmem:[%s4747_s1 + $0x20] sm:$0xff]   ;;  %v3982_v1 = vld [vmem:[%s4747_s1 + $0x28] sm:$0xff]  }
 0x5f8   : > { %3589 = vmatpush3.bf16.msra.mxu0 %v1874_v39  ;;  %3620 = vmatprep.subr.bf16.mxu1 %v3971_v44  ;;  %v3983_v26 = vld [vmem:[%s4747_s1 + $0x30] sm:$0xff]   ;;  %v3984_v27 = vld [vmem:[%s4747_s1 + $0x38] sm:$0xff]   ;;  %v3197_v28 = vld [vmem:[%s4766_s22] ss:$0 sm:$0xff] }
 0x5f9   : > { %3590 = vmatprep.subr.bf16.mxu0 %v1875_v40 }
 0x5fb   : > { %3621 = vmatpush3.bf16.msra.mxu1 %v3971_v44 }
 0x5fc   : > { %3591 = vmatpush3.bf16.msra.mxu0 %v1875_v40  ;;  %3622 = vmatprep.subr.bf16.mxu1 %v3972_v46 }
 0x5fd   : > { %3592 = vmatprep.subr.bf16.mxu0 %v1876_v41 }
 0x5ff   : > { %3623 = vmatpush3.bf16.msra.mxu1 %v3972_v46 }
 0x600   : > { %3593 = vmatpush3.bf16.msra.mxu0 %v1876_v41  ;;  %3624 = vmatprep.subr.bf16.mxu1 %v3973_v48 }
 0x601   : > { %3594 = vmatprep.subr.bf16.mxu0 %v1877_v45 }
 0x603   : > { %3625 = vmatpush3.bf16.msra.mxu1 %v3973_v48 }
 0x604   : > { %3595 = vmatpush3.bf16.msra.mxu0 %v1877_v45  ;;  %3626 = vmatprep.subr.bf16.mxu1 %v3974_v51 }
 0x605   : > { %3596 = vmatprep.subr.bf16.mxu0 %v1878_v47 }
 0x607   : > { %3627 = vmatpush3.bf16.msra.mxu1 %v3974_v51 }
 0x608   : > { %3597 = vmatpush3.bf16.msra.mxu0 %v1878_v47  ;;  %3628 = vmatprep.subr.bf16.mxu1 %v3975_v54 }
 0x609   : > { %3598 = vmatprep.subr.bf16.mxu0 %v1879_v49 }
 0x60b   : > { %3629 = vmatpush3.bf16.msra.mxu1 %v3975_v54 }
 0x60c   : > { %3599 = vmatpush3.bf16.msra.mxu0 %v1879_v49  ;;  %3630 = vmatprep.subr.bf16.mxu1 %v3976_v59 }
 0x60d   : > { %3648 = vmatprep.subr.bf16.mxu0 %v3977_v60 }
 0x60f   : > { %3601 = vmatmul.mubr.bf16.vlgmr.msra.gmra.mrb[0].mxu0 %v3962_v52  ;;  %3631 = vmatpush3.bf16.msra.mxu1 %v3976_v59 }
 0x610   : > { %3604 = vmatprep.mubr.bf16.mxu0 %v3963_v53  ;;  %3760 = vmatprep.subr.bf16.mxu1 %v3977_v60 }
 0x611   : > { %3649 = vmatpush3.bf16.msra.mxu0 %v3977_v60 }
 0x612   : > { %3650 = vmatprep.subr.bf16.mxu0 %v3978_v61 }
 0x615   : > { %3651 = vmatpush3.bf16.msra.mxu0 %v3978_v61 }
 0x616   : > { %3652 = vmatprep.subr.bf16.mxu0 %v3979_v62 }
 0x617   : > { %3605 = vmatmul.mubr.bf16.gmra.mrb[4].mxu0 %v3964_v50 }
 0x618   : > { %3608 = vmatprep.mubr.bf16.mxu0 %v3965_v55 }
 0x619   : > { %3653 = vmatpush3.bf16.msra.mxu0 %v3979_v62 }
 0x61a   : > { %3654 = vmatprep.subr.bf16.mxu0 %v3980_v63 }
 0x61d   : > { %3655 = vmatpush3.bf16.msra.mxu0 %v3980_v63 }
 0x61e   : > { %3656 = vmatprep.subr.bf16.mxu0 %v3981_v0 }
 0x61f   : > { %3609 = vmatmul.mubr.bf16.gmra.mrb[8].mxu0 %v3966_v56 }
 0x620   : > { %3612 = vmatprep.mubr.bf16.mxu0 %v3967_v57 }
 0x621   : > { %3657 = vmatpush3.bf16.msra.mxu0 %v3981_v0 }
 0x622   : > { %3658 = vmatprep.subr.bf16.mxu0 %v3982_v1 }
 0x625   : > { %3659 = vmatpush3.bf16.msra.mxu0 %v3982_v1 }
 0x626   : > { %3660 = vmatprep.subr.bf16.mxu0 %v3983_v26 }
 0x627   : > { %3613 = vmatmul.mubr.bf16.gmra.mrb[12].mxu0 %v3968_v58 }
 0x629   : > { %3661 = vmatpush3.bf16.msra.mxu0 %v3983_v26 }
 0x62a   : > { %3662 = vmatprep.subr.bf16.mxu0 %v3984_v27 }
 0x62d   : > { %3663 = vmatpush3.bf16.msra.mxu0 %v3984_v27 }
 0x6e2   : > { %v3602_v2 = vpop.f32.mrb[0].mxu0 }
 0x6e3   : > { %v1962_v3 = vpop.f32.mrb[1].mxu0 }
 0x6e4   : > { %v3603_v4 = vpop.f32.mrb[2].mxu0 }
 0x6e5   : > { %v2026_v5 = vpack.c.bf16 %v3603_v4, %v3602_v2  ;;  %v1965_v6 = vpop.f32.mrb[3].mxu0 }
 0x6e6   : > { %v2025_v7 = vpack.c.bf16 %v1965_v6, %v1962_v3 }
 0x6e8   : > { %3632 = vmatprep.mubr.bf16.mxu1 %v2025_v7 }
 0x6e9   : > { %3633 = vmatmul.mubr.bf16.vlgmr.msra.gmra.mrb[0].mxu1 %v2026_v5 }
 0x6ea   : > { %v3606_v8 = vpop.f32.mrb[4].mxu0  ;;  %3768 = vmatpush3.bf16.msra.mxu1 %v3977_v60 }
 0x6eb   : > { %v1978_v9 = vpop.f32.mrb[5].mxu0  ;;  %3761 = vmatprep.subr.bf16.mxu1 %v3978_v61 }
 0x6ec   : > { %v3607_v10 = vpop.f32.mrb[6].mxu0 }
 0x6ed   : > { %v2028_v11 = vpack.c.bf16 %v3607_v10, %v3606_v8  ;;  %v1981_v12 = vpop.f32.mrb[7].mxu0 }
 0x6ee   : > { %v2027_v13 = vpack.c.bf16 %v1981_v12, %v1978_v9  ;;  %3769 = vmatpush3.bf16.msra.mxu1 %v3978_v61 }
 0x6ef   : > { %3762 = vmatprep.subr.bf16.mxu1 %v3979_v62 }
 0x6f0   : > { %3636 = vmatprep.mubr.bf16.mxu1 %v2027_v13 }
 0x6f1   : > { %3637 = vmatmul.mubr.bf16.gmra.mrb[4].mxu1 %v2028_v11 }
 0x6f2   : > { %v3610_v14 = vpop.f32.mrb[8].mxu0  ;;  %3770 = vmatpush3.bf16.msra.mxu1 %v3979_v62 }
 0x6f3   : > { %v1994_v15 = vpop.f32.mrb[9].mxu0  ;;  %3763 = vmatprep.subr.bf16.mxu1 %v3980_v63 }
 0x6f4   : > { %v3611_v16 = vpop.f32.mrb[10].mxu0 }
 0x6f5   : > { %v2030_v17 = vpack.c.bf16 %v3611_v16, %v3610_v14  ;;  %v1997_v18 = vpop.f32.mrb[11].mxu0 }
 0x6f6   : > { %v2029_v19 = vpack.c.bf16 %v1997_v18, %v1994_v15  ;;  %3771 = vmatpush3.bf16.msra.mxu1 %v3980_v63 }
 0x6f7   : > { %3764 = vmatprep.subr.bf16.mxu1 %v3981_v0 }
 0x6f8   : > { %3640 = vmatprep.mubr.bf16.mxu1 %v2029_v19 }
 0x6f9   : > { %3641 = vmatmul.mubr.bf16.gmra.mrb[8].mxu1 %v2030_v17 }
 0x6fa   : > { %v3614_v20 = vpop.f32.mrb[12].mxu0  ;;  %3772 = vmatpush3.bf16.msra.mxu1 %v3981_v0 }
 0x6fb   : > { %v2010_v21 = vpop.f32.mrb[13].mxu0  ;;  %3765 = vmatprep.subr.bf16.mxu1 %v3982_v1 }
 0x6fc   : > { %v3615_v22 = vpop.f32.mrb[14].mxu0 }
 0x6fd   : > { %v2032_v23 = vpack.c.bf16 %v3615_v22, %v3614_v20  ;;  %v2013_v25 = vpop.f32.mrb[15].mxu0 }
 0x6fe   : > { %v2031_v24 = vpack.c.bf16 %v2013_v25, %v2010_v21  ;;  %3773 = vmatpush3.bf16.msra.mxu1 %v3982_v1  ;;  %v3206_v21 = vld [vmem:[%s4771_s5] ss:$0 sm:$0xff] }
 0x6ff   : > { %3766 = vmatprep.subr.bf16.mxu1 %v3983_v26 }
 0x700   : > { %3644 = vmatprep.mubr.bf16.mxu1 %v2031_v24 }
 0x701   : > { %3645 = vmatmul.mubr.bf16.gmra.mrb[12].mxu1 %v2032_v23 }
 0x702   : > { %3774 = vmatpush3.bf16.msra.mxu1 %v3983_v26 }
 0x703   : > { %3767 = vmatprep.subr.bf16.mxu1 %v3984_v27 }
 0x706   : > { %3775 = vmatpush3.bf16.msra.mxu1 %v3984_v27 }
 0x7bc   : > { %v3634_v29 = vpop.f32.mrb[0].mxu1 }
 0x7bd   : > { %v2147_v30 = vadd.f32 %v3634_v29, %v3197_v28  ;;  %v2138_v31 = vpop.f32.mrb[1].mxu1 }
 0x7be   : > { %v2139_v32 = vadd.f32 %v3197_v28, %v2138_v31  ;;  %v3635_v33 = vpop.f32.mrb[2].mxu1 }
 0x7bf   : > { %v2150_v34 = vadd.f32 %v3635_v33, %v3197_v28  ;;  %v2141_v35 = vpop.f32.mrb[3].mxu1  ;;  %v2203_v37 = vmax.f32 %v2147_v30, 0.0 }
 0x7c0   : > { %v2142_v36 = vadd.f32 %v3197_v28, %v2141_v35  ;;  %v2201_v39 = vmax.f32 %v2139_v32, 0.0 }
 0x7c1   : > { %v2204_v38 = vmax.f32 %v2150_v34, 0.0 }
 0x7c2   : > { %v2202_v40 = vmax.f32 %v2142_v36, 0.0 }
 0x7c3   : > { %v2218_v41 = vpack.c.bf16 %v2204_v38, %v2203_v37 }
 0x7c4   : > { %v2217_v42 = vpack.c.bf16 %v2202_v40, %v2201_v39  ;;  %v3638_v43 = vpop.f32.mrb[4].mxu1 }
 0x7c5   : > { %v2163_v44 = vadd.f32 %v3638_v43, %v3197_v28  ;;  %v2154_v45 = vpop.f32.mrb[5].mxu1 }
 0x7c6   : > { %v2155_v46 = vadd.f32 %v3197_v28, %v2154_v45  ;;  %v3639_v47 = vpop.f32.mrb[6].mxu1  ;;  %3664 = vmatprep.mubr.bf16.mxu0 %v2217_v42 }
 0x7c7   : > { %v2166_v48 = vadd.f32 %v3639_v47, %v3197_v28  ;;  %v2157_v49 = vpop.f32.mrb[7].mxu1  ;;  %3665 = vmatmul.mubr.bf16.vlgmr.msra.gmra.mrb[16].mxu0 %v2218_v41  ;;  %v2207_v52 = vmax.f32 %v2163_v44, 0.0 }
 0x7c8   : > { %v2158_v51 = vadd.f32 %v3197_v28, %v2157_v49  ;;  %v2205_v54 = vmax.f32 %v2155_v46, 0.0 }
 0x7c9   : > { %v2208_v53 = vmax.f32 %v2166_v48, 0.0 }
 0x7ca   : > { %v2206_v50 = vmax.f32 %v2158_v51, 0.0 }
 0x7cb   : > { %v2220_v55 = vpack.c.bf16 %v2208_v53, %v2207_v52 }
 0x7cc   : > { %v2219_v56 = vpack.c.bf16 %v2206_v50, %v2205_v54  ;;  %v3642_v57 = vpop.f32.mrb[8].mxu1 }
 0x7cd   : > { %v2179_v58 = vadd.f32 %v3642_v57, %v3197_v28  ;;  %v2170_v59 = vpop.f32.mrb[9].mxu1 }
 0x7ce   : > { %v2171_v60 = vadd.f32 %v3197_v28, %v2170_v59  ;;  %v3643_v61 = vpop.f32.mrb[10].mxu1  ;;  %3668 = vmatprep.mubr.bf16.mxu0 %v2219_v56 }
 0x7cf   : > { %v2182_v62 = vadd.f32 %v3643_v61, %v3197_v28  ;;  %v2173_v63 = vpop.f32.mrb[11].mxu1  ;;  %3669 = vmatmul.mubr.bf16.gmra.mrb[20].mxu0 %v2220_v55  ;;  %v2211_v1 = vmax.f32 %v2179_v58, 0.0 }
 0x7d0   : > { %v2174_v0 = vadd.f32 %v3197_v28, %v2173_v63  ;;  %v2209_v3 = vmax.f32 %v2171_v60, 0.0 }
 0x7d1   : > { %v2212_v2 = vmax.f32 %v2182_v62, 0.0 }
 0x7d2   : > { %v2210_v4 = vmax.f32 %v2174_v0, 0.0 }
 0x7d3   : > { %v2222_v5 = vpack.c.bf16 %v2212_v2, %v2211_v1 }
 0x7d4   : > { %v2221_v6 = vpack.c.bf16 %v2210_v4, %v2209_v3  ;;  %v3646_v7 = vpop.f32.mrb[12].mxu1 }
 0x7d5   : > { %v2195_v8 = vadd.f32 %v3646_v7, %v3197_v28  ;;  %v2186_v9 = vpop.f32.mrb[13].mxu1 }
 0x7d6   : > { %v2187_v10 = vadd.f32 %v3197_v28, %v2186_v9  ;;  %v3647_v11 = vpop.f32.mrb[14].mxu1  ;;  %3672 = vmatprep.mubr.bf16.mxu1 %v2221_v6 }
 0x7d7   : > { %v2198_v12 = vadd.f32 %v3647_v11, %v3197_v28  ;;  %v2189_v13 = vpop.f32.mrb[15].mxu1  ;;  %3673 = vmatmul.mubr.bf16.vlgmr.msra.gmra.mrb[16].mxu1 %v2222_v5  ;;  %v2215_v15 = vmax.f32 %v2195_v8, 0.0 }
 0x7d8   : > { %v2190_v14 = vadd.f32 %v3197_v28, %v2189_v13  ;;  %v2213_v17 = vmax.f32 %v2187_v10, 0.0 }
 0x7d9   : > { %v2216_v16 = vmax.f32 %v2198_v12, 0.0 }
 0x7da   : > { %v2214_v18 = vmax.f32 %v2190_v14, 0.0 }
 0x7db   : > { %v2224_v19 = vpack.c.bf16 %v2216_v16, %v2215_v15 }
 0x7dc   : > { %v2223_v20 = vpack.c.bf16 %v2214_v18, %v2213_v17 }
 0x7de   : > { %3676 = vmatprep.mubr.bf16.mxu1 %v2223_v20 }
 0x7df   : > { %3677 = vmatmul.mubr.bf16.gmra.mrb[20].mxu1 %v2224_v19 }
 0x89a   : > { %v3666_v22 = vpop.f32.mrb[16].mxu0 }
 0x89b   : > { %v2339_v23 = vadd.f32 %v3666_v22, %v3206_v21  ;;  %v2330_v25 = vpop.f32.mrb[17].mxu0 }
 0x89c   : > { %v2331_v24 = vadd.f32 %v3206_v21, %v2330_v25  ;;  %v3667_v26 = vpop.f32.mrb[18].mxu0 }
 0x89d   : > { %v2342_v27 = vadd.f32 %v3667_v26, %v3206_v21  ;;  %v2333_v29 = vpop.f32.mrb[19].mxu0  ;;  %v2395_v31 = vmax.f32 %v2339_v23, 0.0 }
 0x89e   : > { %v2334_v30 = vadd.f32 %v3206_v21, %v2333_v29  ;;  %v2393_v28 = vmax.f32 %v2331_v24, 0.0 }
 0x89f   : > { %v2396_v32 = vmax.f32 %v2342_v27, 0.0 }
 0x8a0   : > { %v2394_v33 = vmax.f32 %v2334_v30, 0.0 }
 0x8a1   : > { %v2410_v34 = vpack.c.bf16 %v2396_v32, %v2395_v31 }
 0x8a2   : > { %v2409_v35 = vpack.c.bf16 %v2394_v33, %v2393_v28  ;;  %v3670_v36 = vpop.f32.mrb[20].mxu0 }
 0x8a3   : > { %2422 = vst [vmem:[#allocation2 + $0x8] sm:$0xff] %v2410_v34  ;;  %v2355_v37 = vadd.f32 %v3670_v36, %v3206_v21  ;;  %v2346_v38 = vpop.f32.mrb[21].mxu0 }
 0x8a4   : > { %2421 = vst [vmem:[#allocation2] sm:$0xff] %v2409_v35  ;;  %v2347_v39 = vadd.f32 %v3206_v21, %v2346_v38  ;;  %v3671_v40 = vpop.f32.mrb[22].mxu0 }
 0x8a5   : > { %v2358_v41 = vadd.f32 %v3671_v40, %v3206_v21  ;;  %v2349_v42 = vpop.f32.mrb[23].mxu0  ;;  %v2399_v44 = vmax.f32 %v2355_v37, 0.0 }
 0x8a6   : > { %v2350_v43 = vadd.f32 %v3206_v21, %v2349_v42  ;;  %v2397_v46 = vmax.f32 %v2347_v39, 0.0 }
 0x8a7   : > { %v2400_v45 = vmax.f32 %v2358_v41, 0.0 }
 0x8a8   : > { %v2398_v47 = vmax.f32 %v2350_v43, 0.0 }
 0x8a9   : > { %v2412_v48 = vpack.c.bf16 %v2400_v45, %v2399_v44 }
 0x8aa   : > { %v2411_v49 = vpack.c.bf16 %v2398_v47, %v2397_v46  ;;  %v3674_v51 = vpop.f32.mrb[16].mxu1 }
 0x8ab   : > { %2424 = vst [vmem:[#allocation2 + $0x18] sm:$0xff] %v2412_v48  ;;  %v2371_v52 = vadd.f32 %v3674_v51, %v3206_v21  ;;  %v2362_v53 = vpop.f32.mrb[17].mxu1 }
 0x8ac   : > { %2423 = vst [vmem:[#allocation2 + $0x10] sm:$0xff] %v2411_v49  ;;  %v2363_v54 = vadd.f32 %v3206_v21, %v2362_v53  ;;  %v3675_v50 = vpop.f32.mrb[18].mxu1 }
 0x8ad   : > { %v2374_v55 = vadd.f32 %v3675_v50, %v3206_v21  ;;  %v2365_v56 = vpop.f32.mrb[19].mxu1  ;;  %v2403_v58 = vmax.f32 %v2371_v52, 0.0 }
 0x8ae   : > { %v2366_v57 = vadd.f32 %v3206_v21, %v2365_v56  ;;  %v2401_v60 = vmax.f32 %v2363_v54, 0.0 }
 0x8af   : > { %v2404_v59 = vmax.f32 %v2374_v55, 0.0 }
 0x8b0   : > { %v2402_v61 = vmax.f32 %v2366_v57, 0.0 }
 0x8b1   : > { %v2414_v62 = vpack.c.bf16 %v2404_v59, %v2403_v58 }
 0x8b2   : > { %v2413_v63 = vpack.c.bf16 %v2402_v61, %v2401_v60  ;;  %v3678_v0 = vpop.f32.mrb[20].mxu1 }
 0x8b3   : > { %2426 = vst [vmem:[#allocation2 + $0x28] sm:$0xff] %v2414_v62  ;;  %v2387_v1 = vadd.f32 %v3678_v0, %v3206_v21  ;;  %v2378_v2 = vpop.f32.mrb[21].mxu1 }
 0x8b4   : > { %2425 = vst [vmem:[#allocation2 + $0x20] sm:$0xff] %v2413_v63  ;;  %v2379_v3 = vadd.f32 %v3206_v21, %v2378_v2  ;;  %v3679_v4 = vpop.f32.mrb[22].mxu1 }
 0x8b5   : > { %v2390_v5 = vadd.f32 %v3679_v4, %v3206_v21  ;;  %v2381_v6 = vpop.f32.mrb[23].mxu1  ;;  %v2407_v8 = vmax.f32 %v2387_v1, 0.0 }
 0x8b6   : > { %v2382_v7 = vadd.f32 %v3206_v21, %v2381_v6  ;;  %v2405_v10 = vmax.f32 %v2379_v3, 0.0 }
 0x8b7   : > { %v2408_v9 = vmax.f32 %v2390_v5, 0.0 }
 0x8b8   : > { %v2406_v11 = vmax.f32 %v2382_v7, 0.0 }
 0x8b9   : > { %v2416_v12 = vpack.c.bf16 %v2408_v9, %v2407_v8 }
 0x8ba   : > { %v2415_v13 = vpack.c.bf16 %v2406_v11, %v2405_v10 }
 0x8bb   : > { %2428 = vst [vmem:[#allocation2 + $0x38] sm:$0xff] %v2416_v12 }
 0x8bc   : > { %2427 = vst [vmem:[#allocation2 + $0x30] sm:$0xff] %v2415_v13 }
 0x8bd PF: > { %s4983_s29 = sld [smem:[#allocation24_spill]] }
 0x8c3   : > { %p3215_p1 = scmp.ne.s32.totalorder %s4983_s29, 4 }
 0x8c4   : > { %v3985_v14 = vld [vmem:[#allocation14] sm:$0xff] (!%p3215_p1)   ;;  %v3986_v15 = vld [vmem:[#allocation14 + $0x8] sm:$0xff] (!%p3215_p1)   ;;  %v3987_v16 = vld [vmem:[#allocation14 + $0x10] sm:$0xff] (!%p3215_p1)   ;;  %s4984_s18 = sld [smem:[#allocation37_spill]] (!%p3215_p1)  ;;  %s4985_s22 = sld [smem:[#allocation38_spill]] (!%p3215_p1) }
 0x8c5   : > { %2432 = sbr.rel (%p3215_p1) target bundleno = 2741 (0xab5), region = 124  ;;  %3680 = vmatprep.subr.bf16.mxu0 (!%p3215_p1), %v3985_v14  ;;  %v3988_v17 = vld [vmem:[#allocation14 + $0x18] sm:$0xff] (!%p3215_p1)   ;;  %v2437_v18 = vld [vmem:[#allocation3] sm:$0xff] (!%p3215_p1)  ;;  %v3994_v21 = vld [vmem:[#allocation15 + $0x8] sm:$0xff] (!%p3215_p1)  }
 0x8c6   : > { %3681 = vmatpush3.bf16.msra.mxu0 (!%p3215_p1), %v3985_v14  ;;  %3696 = vmatprep.mubr.bf16.mxu0 (!%p3215_p1), %v2437_v18  ;;  %v3989_v19 = vld [vmem:[#allocation14 + $0x20] sm:$0xff] (!%p3215_p1)   ;;  %v3995_v22 = vld [vmem:[#allocation15 + $0x10] sm:$0xff] (!%p3215_p1)   ;;  %v3990_v23 = vld [vmem:[#allocation14 + $0x28] sm:$0xff] (!%p3215_p1)  }
 0x8c7   : > { %3682 = vmatprep.subr.bf16.mxu0 (!%p3215_p1), %v3986_v15  ;;  %v3993_v20 = vld [vmem:[#allocation15] sm:$0xff] (!%p3215_p1)   ;;  %v3996_v25 = vld [vmem:[#allocation15 + $0x18] sm:$0xff] (!%p3215_p1)   ;;  %v3991_v24 = vld [vmem:[#allocation14 + $0x30] sm:$0xff] (!%p3215_p1)  }
 0x8c8   : > { %3712 = vmatprep.subr.bf16.mxu1 (!%p3215_p1), %v3993_v20  ;;  %v3997_v26 = vld [vmem:[#allocation15 + $0x20] sm:$0xff] (!%p3215_p1)   ;;  %v3992_v27 = vld [vmem:[#allocation14 + $0x38] sm:$0xff] (!%p3215_p1)   ;;  %v3998_v29 = vld [vmem:[#allocation15 + $0x28] sm:$0xff] (!%p3215_p1)  }
 0x8c9   : > { %3713 = vmatpush3.bf16.msra.mxu1 (!%p3215_p1), %v3993_v20  ;;  %v2438_v30 = vld [vmem:[#allocation3 + $0x8] sm:$0xff] (!%p3215_p1)  ;;  %v2439_v31 = vld [vmem:[#allocation3 + $0x10] sm:$0xff] (!%p3215_p1)  ;;  %v2440_v32 = vld [vmem:[#allocation3 + $0x18] sm:$0xff] (!%p3215_p1) }
 0x8ca   : > { %3683 = vmatpush3.bf16.msra.mxu0 (!%p3215_p1), %v3986_v15  ;;  %3714 = vmatprep.subr.bf16.mxu1 (!%p3215_p1), %v3994_v21  ;;  %v2441_v28 = vld [vmem:[#allocation3 + $0x20] sm:$0xff] (!%p3215_p1)  ;;  %v2442_v33 = vld [vmem:[#allocation3 + $0x28] sm:$0xff] (!%p3215_p1)  ;;  %v2443_v34 = vld [vmem:[#allocation3 + $0x30] sm:$0xff] (!%p3215_p1) }
 0x8cb   : > { %3684 = vmatprep.subr.bf16.mxu0 (!%p3215_p1), %v3987_v16  ;;  %v2444_v35 = vld [vmem:[#allocation3 + $0x38] sm:$0xff] (!%p3215_p1)  ;;  %v3999_v36 = vld [vmem:[#allocation15 + $0x30] sm:$0xff] (!%p3215_p1)   ;;  %v3216_v38 = vld [vmem:[%s4984_s18] ss:$0 sm:$0xff] (!%p3215_p1) }
 0x8cc   : > { %v4000_v37 = vld [vmem:[#allocation15 + $0x38] sm:$0xff]  }
 0x8cd   : > { %3715 = vmatpush3.bf16.msra.mxu1 %v3994_v21 }
 0x8ce   : > { %3685 = vmatpush3.bf16.msra.mxu0 %v3987_v16  ;;  %3716 = vmatprep.subr.bf16.mxu1 %v3995_v22 }
 0x8cf   : > { %3686 = vmatprep.subr.bf16.mxu0 %v3988_v17 }
 0x8d1   : > { %3717 = vmatpush3.bf16.msra.mxu1 %v3995_v22 }
 0x8d2   : > { %3687 = vmatpush3.bf16.msra.mxu0 %v3988_v17  ;;  %3718 = vmatprep.subr.bf16.mxu1 %v3996_v25 }
 0x8d3   : > { %3688 = vmatprep.subr.bf16.mxu0 %v3989_v19 }
 0x8d5   : > { %3719 = vmatpush3.bf16.msra.mxu1 %v3996_v25 }
 0x8d6   : > { %3689 = vmatpush3.bf16.msra.mxu0 %v3989_v19  ;;  %3720 = vmatprep.subr.bf16.mxu1 %v3997_v26 }
 0x8d7   : > { %3690 = vmatprep.subr.bf16.mxu0 %v3990_v23 }
 0x8d9   : > { %3721 = vmatpush3.bf16.msra.mxu1 %v3997_v26 }
 0x8da   : > { %3691 = vmatpush3.bf16.msra.mxu0 %v3990_v23  ;;  %3722 = vmatprep.subr.bf16.mxu1 %v3998_v29 }
 0x8db   : > { %3692 = vmatprep.subr.bf16.mxu0 %v3991_v24 }
 0x8dd   : > { %3723 = vmatpush3.bf16.msra.mxu1 %v3998_v29 }
 0x8de   : > { %3693 = vmatpush3.bf16.msra.mxu0 %v3991_v24  ;;  %3724 = vmatprep.subr.bf16.mxu1 %v3999_v36 }
 0x8df   : > { %3694 = vmatprep.subr.bf16.mxu0 %v3992_v27 }
 0x8e1   : > { %3725 = vmatpush3.bf16.msra.mxu1 %v3999_v36 }
 0x8e2   : > { %3695 = vmatpush3.bf16.msra.mxu0 %v3992_v27  ;;  %3726 = vmatprep.subr.bf16.mxu1 %v4000_v37 }
 0x8e5   : > { %3697 = vmatmul.mubr.bf16.vlgmr.msra.gmra.mrb[0].mxu0 %v2438_v30  ;;  %3727 = vmatpush3.bf16.msra.mxu1 %v4000_v37 }
 0x8e6   : > { %3700 = vmatprep.mubr.bf16.mxu0 %v2439_v31 }
 0x8ed   : > { %3701 = vmatmul.mubr.bf16.gmra.mrb[4].mxu0 %v2440_v32  ;;  %v3225_v32 = vld [vmem:[%s4985_s22] ss:$0 sm:$0xff] }
 0x8ee   : > { %3704 = vmatprep.mubr.bf16.mxu0 %v2441_v28 }
 0x8f5   : > { %3705 = vmatmul.mubr.bf16.gmra.mrb[8].mxu0 %v2442_v33 }
 0x8f6   : > { %3708 = vmatprep.mubr.bf16.mxu0 %v2443_v34 }
 0x8fd   : > { %3709 = vmatmul.mubr.bf16.gmra.mrb[12].mxu0 %v2444_v35 }
 0x9b8   : > { %v3698_v39 = vpop.f32.mrb[0].mxu0 }
 0x9b9   : > { %v2559_v40 = vadd.f32 %v3698_v39, %v3216_v38  ;;  %v2550_v41 = vpop.f32.mrb[1].mxu0 }
 0x9ba   : > { %v2551_v42 = vadd.f32 %v3216_v38, %v2550_v41  ;;  %v3699_v43 = vpop.f32.mrb[2].mxu0 }
 0x9bb   : > { %v2562_v44 = vadd.f32 %v3699_v43, %v3216_v38  ;;  %v2553_v45 = vpop.f32.mrb[3].mxu0  ;;  %v2615_v47 = vmax.f32 %v2559_v40, 0.0 }
 0x9bc   : > { %v2554_v46 = vadd.f32 %v3216_v38, %v2553_v45  ;;  %v2613_v49 = vmax.f32 %v2551_v42, 0.0 }
 0x9bd   : > { %v2616_v48 = vmax.f32 %v2562_v44, 0.0 }
 0x9be   : > { %v2614_v51 = vmax.f32 %v2554_v46, 0.0 }
 0x9bf   : > { %v2630_v52 = vpack.c.bf16 %v2616_v48, %v2615_v47 }
 0x9c0   : > { %v3702_v53 = vpop.f32.mrb[4].mxu0  ;;  %v2629_v54 = vpack.c.bf16 %v2614_v51, %v2613_v49 }
 0x9c1   : > { %v2575_v50 = vadd.f32 %v3702_v53, %v3216_v38  ;;  %v2566_v55 = vpop.f32.mrb[5].mxu0 }
 0x9c2   : > { %v2567_v56 = vadd.f32 %v3216_v38, %v2566_v55  ;;  %v3703_v57 = vpop.f32.mrb[6].mxu0  ;;  %3728 = vmatprep.mubr.bf16.mxu1 %v2629_v54 }
 0x9c3   : > { %v2578_v58 = vadd.f32 %v3703_v57, %v3216_v38  ;;  %v2569_v59 = vpop.f32.mrb[7].mxu0  ;;  %3729 = vmatmul.mubr.bf16.vlgmr.msra.gmra.mrb[0].mxu1 %v2630_v52  ;;  %v2619_v61 = vmax.f32 %v2575_v50, 0.0 }
 0x9c4   : > { %v2570_v60 = vadd.f32 %v3216_v38, %v2569_v59  ;;  %v2617_v63 = vmax.f32 %v2567_v56, 0.0 }
 0x9c5   : > { %v2620_v62 = vmax.f32 %v2578_v58, 0.0 }
 0x9c6   : > { %v2618_v0 = vmax.f32 %v2570_v60, 0.0 }
 0x9c7   : > { %v2632_v1 = vpack.c.bf16 %v2620_v62, %v2619_v61 }
 0x9c8   : > { %v2631_v2 = vpack.c.bf16 %v2618_v0, %v2617_v63  ;;  %v3706_v3 = vpop.f32.mrb[8].mxu0 }
 0x9c9   : > { %v2591_v4 = vadd.f32 %v3706_v3, %v3216_v38  ;;  %v2582_v5 = vpop.f32.mrb[9].mxu0 }
 0x9ca   : > { %v2583_v6 = vadd.f32 %v3216_v38, %v2582_v5  ;;  %v3707_v7 = vpop.f32.mrb[10].mxu0  ;;  %3732 = vmatprep.mubr.bf16.mxu1 %v2631_v2 }
 0x9cb   : > { %v2594_v8 = vadd.f32 %v3707_v7, %v3216_v38  ;;  %v2585_v9 = vpop.f32.mrb[11].mxu0  ;;  %3733 = vmatmul.mubr.bf16.gmra.mrb[4].mxu1 %v2632_v1  ;;  %v2623_v11 = vmax.f32 %v2591_v4, 0.0 }
 0x9cc   : > { %v2586_v10 = vadd.f32 %v3216_v38, %v2585_v9  ;;  %v2621_v13 = vmax.f32 %v2583_v6, 0.0 }
 0x9cd   : > { %v2624_v12 = vmax.f32 %v2594_v8, 0.0 }
 0x9ce   : > { %v2622_v14 = vmax.f32 %v2586_v10, 0.0 }
 0x9cf   : > { %v2634_v15 = vpack.c.bf16 %v2624_v12, %v2623_v11 }
 0x9d0   : > { %v2633_v16 = vpack.c.bf16 %v2622_v14, %v2621_v13  ;;  %v3710_v17 = vpop.f32.mrb[12].mxu0 }
 0x9d1   : > { %v2607_v18 = vadd.f32 %v3710_v17, %v3216_v38  ;;  %v2598_v19 = vpop.f32.mrb[13].mxu0 }
 0x9d2   : > { %v2599_v20 = vadd.f32 %v3216_v38, %v2598_v19  ;;  %v3711_v21 = vpop.f32.mrb[14].mxu0  ;;  %3736 = vmatprep.mubr.bf16.mxu1 %v2633_v16 }
 0x9d3   : > { %v2610_v22 = vadd.f32 %v3711_v21, %v3216_v38  ;;  %v2601_v23 = vpop.f32.mrb[15].mxu0  ;;  %3737 = vmatmul.mubr.bf16.gmra.mrb[8].mxu1 %v2634_v15  ;;  %v2627_v24 = vmax.f32 %v2607_v18, 0.0 }
 0x9d4   : > { %v2602_v25 = vadd.f32 %v3216_v38, %v2601_v23  ;;  %v2625_v27 = vmax.f32 %v2599_v20, 0.0 }
 0x9d5   : > { %v2628_v26 = vmax.f32 %v2610_v22, 0.0 }
 0x9d6   : > { %v2626_v29 = vmax.f32 %v2602_v25, 0.0 }
 0x9d7   : > { %v2636_v30 = vpack.c.bf16 %v2628_v26, %v2627_v24 }
 0x9d8   : > { %v2635_v31 = vpack.c.bf16 %v2626_v29, %v2625_v27 }
 0x9da   : > { %3740 = vmatprep.mubr.bf16.mxu1 %v2635_v31 }
 0x9db   : > { %3741 = vmatmul.mubr.bf16.gmra.mrb[12].mxu1 %v2636_v30 }
 0xa96   : > { %v3730_v28 = vpop.f32.mrb[0].mxu1 }
 0xa97   : > { %v2751_v33 = vadd.f32 %v3730_v28, %v3225_v32  ;;  %v2742_v34 = vpop.f32.mrb[1].mxu1 }
 0xa98   : > { %v2743_v35 = vadd.f32 %v3225_v32, %v2742_v34  ;;  %v3731_v36 = vpop.f32.mrb[2].mxu1 }
 0xa99   : > { %2807 = vst [vmem:[#allocation16 + $0x10] sm:$0xff] %v2751_v33  ;;  %v2754_v37 = vadd.f32 %v3731_v36, %v3225_v32  ;;  %v2745_v38 = vpop.f32.mrb[3].mxu1 }
 0xa9a   : > { %2805 = vst [vmem:[#allocation16] sm:$0xff] %v2743_v35  ;;  %v2746_v39 = vadd.f32 %v3225_v32, %v2745_v38 }
 0xa9b   : > { %2808 = vst [vmem:[#allocation16 + $0x18] sm:$0xff] %v2754_v37 }
 0xa9c   : > { %2806 = vst [vmem:[#allocation16 + $0x8] sm:$0xff] %v2746_v39 }
 0xa9e   : > { %v3734_v40 = vpop.f32.mrb[4].mxu1 }
 0xa9f   : > { %v2767_v41 = vadd.f32 %v3734_v40, %v3225_v32  ;;  %v2758_v42 = vpop.f32.mrb[5].mxu1 }
 0xaa0   : > { %v2759_v43 = vadd.f32 %v3225_v32, %v2758_v42  ;;  %v3735_v44 = vpop.f32.mrb[6].mxu1 }
 0xaa1   : > { %2811 = vst [vmem:[#allocation16 + $0x30] sm:$0xff] %v2767_v41  ;;  %v2770_v45 = vadd.f32 %v3735_v44, %v3225_v32  ;;  %v2761_v46 = vpop.f32.mrb[7].mxu1 }
 0xaa2   : > { %2809 = vst [vmem:[#allocation16 + $0x20] sm:$0xff] %v2759_v43  ;;  %v2762_v47 = vadd.f32 %v3225_v32, %v2761_v46 }
 0xaa3   : > { %2812 = vst [vmem:[#allocation16 + $0x38] sm:$0xff] %v2770_v45 }
 0xaa4   : > { %2810 = vst [vmem:[#allocation16 + $0x28] sm:$0xff] %v2762_v47 }
 0xaa6   : > { %v3738_v48 = vpop.f32.mrb[8].mxu1 }
 0xaa7   : > { %v2783_v49 = vadd.f32 %v3738_v48, %v3225_v32  ;;  %v2774_v51 = vpop.f32.mrb[9].mxu1 }
 0xaa8   : > { %v2775_v52 = vadd.f32 %v3225_v32, %v2774_v51  ;;  %v3739_v53 = vpop.f32.mrb[10].mxu1 }
 0xaa9   : > { %2815 = vst [vmem:[#allocation16 + $0x50] sm:$0xff] %v2783_v49  ;;  %v2786_v54 = vadd.f32 %v3739_v53, %v3225_v32  ;;  %v2777_v50 = vpop.f32.mrb[11].mxu1 }
 0xaaa   : > { %2813 = vst [vmem:[#allocation16 + $0x40] sm:$0xff] %v2775_v52  ;;  %v2778_v55 = vadd.f32 %v3225_v32, %v2777_v50 }
 0xaab   : > { %2816 = vst [vmem:[#allocation16 + $0x58] sm:$0xff] %v2786_v54 }
 0xaac   : > { %2814 = vst [vmem:[#allocation16 + $0x48] sm:$0xff] %v2778_v55 }
 0xaae   : > { %v3742_v56 = vpop.f32.mrb[12].mxu1 }
 0xaaf   : > { %v2799_v57 = vadd.f32 %v3742_v56, %v3225_v32  ;;  %v2790_v58 = vpop.f32.mrb[13].mxu1 }
 0xab0   : > { %v2791_v59 = vadd.f32 %v3225_v32, %v2790_v58  ;;  %v3743_v60 = vpop.f32.mrb[14].mxu1 }
 0xab1   : > { %2819 = vst [vmem:[#allocation16 + $0x70] sm:$0xff] %v2799_v57  ;;  %v2802_v61 = vadd.f32 %v3743_v60, %v3225_v32  ;;  %v2793_v62 = vpop.f32.mrb[15].mxu1 }
 0xab2   : > { %2817 = vst [vmem:[#allocation16 + $0x60] sm:$0xff] %v2791_v59  ;;  %v2794_v63 = vadd.f32 %v3225_v32, %v2793_v62 }
 0xab3   : > { %2820 = vst [vmem:[#allocation16 + $0x78] sm:$0xff] %v2802_v61 }
 0xab4   : > { %2818 = vst [vmem:[#allocation16 + $0x68] sm:$0xff] %v2794_v63 }
 0xab5 PF: > { %p3851_p2 = scmp.eq.s32.totalorder %s4450_s19, 4  ;;  %s4341_s6 = smov [#allocation16]  }
 0xab6   : > { %s2837_s7 = sshll.u32 %s4341_s6, 4  ;;  %s2838_s7 = int_to_ptr.vmem [resolvable:$true] %s2837_s7 }
 0xab7   : > { %s4229_s24 = scalar_lea.vmem %s2838_s7, 2048  ;;  %s4235_s5 = scalar_lea.vmem %s2838_s7, 4096 }
 0xab8   : > { %p4230_p13 = scmp.ne.s32.totalorder %s2838_s7, %s4229_s24  ;;  %p4236_p4 = scmp.lt.s32.totalorder %s2838_s7, %s2838_s7 }
 0xab9   : > { %p4237_p6 = scmp.lt.s32.totalorder %s4235_s5, %s4229_s24 }
 0xaba   : > { %p4231_p7 = pnand %p4230_p13, %p3851_p2 }
 0xabb   : > { %p4238_p10 = por %p4237_p6, %p4236_p4 }
 0xabc   : > { %p4232_p12 = pneg %p4231_p7 }
 0xabe   : > { %p4239_p9 = pnand %p4238_p10, %p4232_p12 }
 0xac0   : > { %4242 = shalt.err (!%p4239_p9)
}
 0xac1   : > { %s4986_s3 = sld [smem:[#allocation39_spill]] }
 0xac7   : > { %s4243_s16 = scalar_lea.hbm %s4986_s3, 2048 }
 0xac8   : > { %p4244_p5 = scmp.ne.s32.totalorder %s4986_s3, %s4243_s16  ;;  %p4249_p3 = scmp.lt.u32.totalorder %s4243_s16, %s4986_s3 }
 0xaca   : > { %p4245_p11 = pnand %p4244_p5, %p3851_p2 }
 0xacc   : > { %p4246_p0 = pneg %p4245_p11 }
 0xace   : > { %p4251_p8 = pnand %p4249_p3, %p4246_p0 }
 0xad0   : > { %4254 = shalt.err (!%p4251_p8)
}
 0xad1   : > { %s4342_s4 = smov 128   ;;  %s4343_s21 = smov 8  }
 0xad2   : > { %3805 = dma.vmem_to_hbm [thread:$0]  (%p3851_p2), %s2838_s7, 2048, %s4986_s3, [#allocation6], %s4342_s4, %s4342_s4, %s4343_s21  }
 0xad3 PF: > { %s4987_s28 = sld [smem:[#allocation26_spill]] }
 0xad9   : > { %p3852_p1 = scmp.ge.s32.totalorder %s4987_s28, 2  ;;  %s4988_s29 = sadd.s32 4294967294, %s4987_s28  }
 0xada   : > { %p3853_p13 = scmp.eq.s32.totalorder %s4988_s29, 4 }
 0xadc   : > { %p3835_p7 = pnand %p3853_p13, %p3852_p1 }
 0xade   : > { %4304 = dma.done.wait (!%p3835_p7), [#allocation6], 2048  }
 0xadf   : > { %4306 = vsyncadd (!%p3835_p7), [#allocation6], 4294965248  ;;  %s32_s18 = sadd.s32 1, %s4987_s28   ;;  %s4989_s16 = sld [smem:[#allocation25_spill]] }
 0xae0   : > { %p29_p12 = scmp.ge.s32.totalorder %s32_s18, 7   ;;  %s4990_s17 = sld [smem:[#allocation27_spill]] }
 0xae1   : > { %s4991_s29 = smov %s4313_s30  ;;  %s4992_s30 = smov %s4317_s15 }
 0xae2   : > { %s4993_s15 = smov %s4643_s26  ;;  %31 = sbr.rel (!%p29_p12) target bundleno = 21 (0x15), region = 191 }
 0xae9   :  { %2858 = vsyncpa [#allocation5], 1 }
 0xaea   :  { %2860 = vsyncpa [#allocation5 + $0x1], 1 }
 0xaeb   :  { %2861 = vsyncpa [#allocation8], 1 }
 0xaec   :  { %2862 = vsyncpa [#allocation11], 1 }
 0xaed   :  { %2863 = vsyncpa [#allocation6], 1 }
 0xaee   :  { %2865 = vsyncpa [#allocation6 + $0x1], 1 }

</bundles_post_ra>
